<compile_context>
chip_gen: v6e
topology: v6e:2x2x1
jax: 0.10.0
libtpu: 0.0.40
codegen_flags: <defaults>
</compile_context>

<pallas_src>
import jax
import jax.numpy as jnp
from jax.experimental import pallas as pl
from jax.experimental.pallas import tpu as pltpu

NUM_NEURON = 120
BN_EPS = 1e-5
LRELU_SLOPE = 0.1  # module uses negative_slope=0.1 everywhere


def _lrelu(x):
    return jnp.where(x >= 0, x, LRELU_SLOPE * x)


# ---------------------------------------------------------------------------
# Kernel
# ---------------------------------------------------------------------------
def f_nn_kernel(
    x_ref,       # (B, 8)        f32   (input padded 4 -> 8)
    w_in_ref,    # (8, 128)      f32   ifb weight (bias dropped: BN no-op)
    w_hbm,       # (5, 128, 128) bf16  lfb, fblfb1, fblfb2, fb, fbl  (in HBM)
    bn_ref,      # (12, 128)     f32   [g_ifb, b_ifb, g_lfb, b_lfb, ...]
    w_ff_ref,    # (128, 5)      f32   fused ff head weight
    b_ff_ref,    # (1, 5)        f32   fused ff head bias
    o_ref,       # (B, 5)        f32
    wbuf,        # scratch VMEM (5, 128, 128) bf16
    sems,        # scratch DMA sems (5,)
):
    n_hidden = w_hbm.shape[0]  # 5, static
    inv_b = 1.0 / x_ref.shape[0]  # static batch size

    # Kick off every hidden-layer weight DMA immediately; each is waited
    # just-in-time before its matmul so HBM->VMEM traffic overlaps the
    # preceding layers' BN / LeakyReLU work.
    for i in range(n_hidden):
        pltpu.make_async_copy(w_hbm.at[i], wbuf.at[i], sems.at[i]).start()

    def lin(h, i):
        # Hidden linears: bf16 weights + bf16 LHS, f32 accumulation.
        pltpu.make_async_copy(w_hbm.at[i], wbuf.at[i], sems.at[i]).wait()
        return jnp.dot(h.astype(jnp.bfloat16), wbuf[i],
                       preferred_element_type=jnp.float32)

    def bn(h, idx):
        # Training-mode BatchNorm1d folded into a single scale/shift.
        g = bn_ref[pl.ds(2 * idx, 1), :]
        be = bn_ref[pl.ds(2 * idx + 1, 1), :]
        s1 = jnp.sum(h, axis=0, keepdims=True)
        s2 = jnp.sum(h * h, axis=0, keepdims=True)
        mean = s1 * inv_b
        var = jnp.maximum(s2 * inv_b - mean * mean, 0.0)
        scale = g * jax.lax.rsqrt(var + BN_EPS)
        shift = be - mean * scale
        return h * scale + shift

    x = x_ref[...].astype(jnp.float32)

    # ifb: Linear(4->N) + BN   (small f32 weight, resident in VMEM)
    x = bn(jnp.dot(x, w_in_ref[...], preferred_element_type=jnp.float32), 0)

    # lfb: LeakyReLU -> Linear -> BN, residual, LeakyReLU
    s = x
    x = _lrelu(bn(lin(_lrelu(x), 0), 1) + s)

    # fblfb: Linear -> BN -> LeakyReLU -> Linear -> BN, residual, LeakyReLU
    s = x
    h = _lrelu(bn(lin(x, 1), 2))
    x = _lrelu(bn(lin(h, 2), 3) + s)

    # fb: Linear -> BN, residual, LeakyReLU
    s = x
    x = _lrelu(bn(lin(x, 3), 4) + s)

    # fbl: Linear -> BN -> LeakyReLU, residual (no trailing LeakyReLU)
    s = x
    x = _lrelu(bn(lin(x, 4), 5)) + s

    # ff: three bias-only linears fused in the wrapper into one (N,5) + bias
    out = jnp.dot(x, w_ff_ref[...], preferred_element_type=jnp.float32) + b_ff_ref[...]
    o_ref[...] = out.astype(o_ref.dtype)


# ---------------------------------------------------------------------------
# Parameter init (PyTorch-style), kernel-side preprocessing, references
# ---------------------------------------------------------------------------
def init_params(key, num_neuron=NUM_NEURON):
    """Deterministic PyTorch-style init. Linear weights returned as (in, out)."""
    params = {}

    def linear(key, fan_in, fan_out):
        kw, kb = jax.random.split(key)
        bound = 1.0 / jnp.sqrt(fan_in)
        w = jax.random.uniform(kw, (fan_in, fan_out), jnp.float32, -bound, bound)
        b = jax.random.uniform(kb, (1, fan_out), jnp.float32, -bound, bound)
        return w, b

    def bnp(fan_out):
        return jnp.ones((1, fan_out), jnp.float32), jnp.zeros((1, fan_out), jnp.float32)

    keys = jax.random.split(key, 9)
    n = num_neuron
    params["ifb_lin"] = linear(keys[0], 4, n)
    params["ifb_bn"] = bnp(n)
    params["lfb_lin"] = linear(keys[1], n, n)
    params["lfb_bn"] = bnp(n)
    params["fblfb_lin1"] = linear(keys[2], n, n)
    params["fblfb_bn1"] = bnp(n)
    params["fblfb_lin2"] = linear(keys[3], n, n)
    params["fblfb_bn2"] = bnp(n)
    params["fb_lin"] = linear(keys[4], n, n)
    params["fb_bn"] = bnp(n)
    params["fbl_lin"] = linear(keys[5], n, n)
    params["fbl_bn"] = bnp(n)
    params["ff_lin1"] = linear(keys[6], n, n)
    params["ff_lin2"] = linear(keys[7], n, n)
    params["ff_lin3"] = linear(keys[8], n, 5)
    return params


def prepare_params(p, num_neuron=NUM_NEURON):
    """One-time preprocessing (plain XLA, outside the kernel):
    drop BN-fed biases, fuse the 3 ff linears, zero-pad features 120->128,
    stack hidden weights (bf16) and BN rows, pad ifb weight rows 4->8."""
    n = num_neuron
    npad = 128 * ((n + 127) // 128)  # 128

    def pad_nn(w):   # (n, n) -> (npad, npad)
        return jnp.pad(w, ((0, npad - n), (0, npad - n)))

    def pad_row(v):  # (1, n) -> (1, npad); padded lanes get gamma=beta=0
        return jnp.pad(v, ((0, 0), (0, npad - n)))

    # ifb weight (4, n) -> (8, npad), f32
    w_in = jnp.pad(p["ifb_lin"][0], ((0, 4), (0, npad - n))).astype(jnp.float32)

    # Five hidden (n, n) weights -> stacked (5, npad, npad) bf16
    w_stack = jnp.stack([
        pad_nn(p["lfb_lin"][0]),
        pad_nn(p["fblfb_lin1"][0]),
        pad_nn(p["fblfb_lin2"][0]),
        pad_nn(p["fb_lin"][0]),
        pad_nn(p["fbl_lin"][0]),
    ]).astype(jnp.bfloat16)

    # Six BN (gamma, beta) pairs -> (12, npad) f32
    bn_rows = []
    for name in ["ifb_bn", "lfb_bn", "fblfb_bn1", "fblfb_bn2", "fb_bn", "fbl_bn"]:
        g, b = p[name]
        bn_rows.append(pad_row(g))
        bn_rows.append(pad_row(b))
    bn_stack = jnp.concatenate(bn_rows, axis=0)

    # Fuse ff: x@W1+b1 -> @W2+b2 -> @W3+b3 == x@(W1@W2@W3) + ((b1@W2+b2)@W3+b3)
    w1, b1 = p["ff_lin1"]
    w2, b2 = p["ff_lin2"]
    w3, b3 = p["ff_lin3"]
    w_ff = jnp.pad(w1 @ w2 @ w3, ((0, npad - n), (0, 0)))   # (npad, 5), f32
    b_ff = (b1 @ w2 + b2) @ w3 + b3                          # (1, 5),   f32
    return w_in, w_stack, bn_stack, w_ff, b_ff


@jax.jit
def f_nn_forward(x, w_in, w_stack, bn_stack, w_ff, b_ff):
    batch = x.shape[0]
    x_pad = jnp.pad(x, ((0, 0), (0, w_in.shape[0] - x.shape[1])))
    vmem = pl.BlockSpec(memory_space=pltpu.MemorySpace.VMEM)
    hbm = pl.BlockSpec(memory_space=pl.ANY)
    return pl.pallas_call(
        f_nn_kernel,
        out_shape=jax.ShapeDtypeStruct((batch, 5), jnp.float32),
        in_specs=[vmem, vmem, hbm, vmem, vmem, vmem],
        out_specs=vmem,
        scratch_shapes=[
            pltpu.VMEM(w_stack.shape, jnp.bfloat16),
            pltpu.SemaphoreType.DMA((w_stack.shape[0],)),
        ],
        compiler_params=pltpu.CompilerParams(vmem_limit_bytes=32 * 1024 * 1024),
    )(x_pad, w_in, w_stack, bn_stack, w_ff, b_ff)


def f_nn_prepared_reference(x, w_in, w_stack, bn_stack, w_ff, b_ff):
    """Pure-JAX mirror of the kernel math (incl. bf16 weight/LHS casts) —
    tight correctness check of the kernel against the prepared params."""
    x = jnp.pad(x, ((0, 0), (0, w_in.shape[0] - x.shape[1]))).astype(jnp.float32)
    inv_b = 1.0 / x.shape[0]

    def bn(h, idx):
        g = bn_stack[2 * idx:2 * idx + 1, :]
        be = bn_stack[2 * idx + 1:2 * idx + 2, :]
        mean = jnp.sum(h, axis=0, keepdims=True) * inv_b
        var = jnp.maximum(jnp.sum(h * h, axis=0, keepdims=True) * inv_b - mean * mean, 0.0)
        scale = g * jax.lax.rsqrt(var + BN_EPS)
        return h * scale + (be - mean * scale)

    def lin(h, i):
        return jnp.dot(h.astype(jnp.bfloat16), w_stack[i],
                       preferred_element_type=jnp.float32)

    x = bn(jnp.dot(x, w_in, preferred_element_type=jnp.float32), 0)
    s = x
    x = _lrelu(bn(lin(_lrelu(x), 0), 1) + s)
    s = x
    h = _lrelu(bn(lin(x, 1), 2))
    x = _lrelu(bn(lin(h, 2), 3) + s)
    s = x
    x = _lrelu(bn(lin(x, 3), 4) + s)
    s = x
    x = _lrelu(bn(lin(x, 4), 5)) + s
    return jnp.dot(x, w_ff, preferred_element_type=jnp.float32) + b_ff


def f_nn_reference(x, p):
    """Pure-JAX f32 reference using the ORIGINAL (unfused, biased) params,
    training-mode BN semantics matching the PyTorch module's forward()."""
    def lin(h, wb):
        w, b = wb
        return h @ w + b

    def bn(h, gb):
        g, b = gb
        mean = jnp.mean(h, axis=0, keepdims=True)
        var = jnp.mean((h - mean) ** 2, axis=0, keepdims=True)
        return (h - mean) * jax.lax.rsqrt(var + BN_EPS) * g + b

    x = bn(lin(x, p["ifb_lin"]), p["ifb_bn"])
    s = x
    x = bn(lin(_lrelu(x), p["lfb_lin"]), p["lfb_bn"]) + s
    x = _lrelu(x)
    s = x
    h = _lrelu(bn(lin(x, p["fblfb_lin1"]), p["fblfb_bn1"]))
    x = bn(lin(h, p["fblfb_lin2"]), p["fblfb_bn2"]) + s
    x = _lrelu(x)
    s = x
    x = bn(lin(x, p["fb_lin"]), p["fb_bn"]) + s
    x = _lrelu(x)
    s = x
    x = _lrelu(bn(lin(x, p["fbl_lin"]), p["fbl_bn"])) + s
    x = lin(x, p["ff_lin1"])
    x = lin(x, p["ff_lin2"])
    x = lin(x, p["ff_lin3"])
    return x


if __name__ == "__main__":
    key = jax.random.PRNGKey(0)
    k_x, k_p = jax.random.split(key)

    batch = 8
    x = jax.random.normal(k_x, (batch, 4), dtype=jnp.float32)
    params = init_params(k_p, NUM_NEURON)
    flat = prepare_params(params, NUM_NEURON)

    out = jax.block_until_ready(f_nn_forward(x, *flat))
    assert out.shape == (batch, 5), out.shape

    # Tight check: kernel vs. an exact pure-JAX mirror of the prepared math
    # (same bf16 weight quantization) -> verifies the kernel itself.
    ref_q = f_nn_prepared_reference(x, *flat)
    err_q = float(jnp.max(jnp.abs(out - ref_q)))
    assert jnp.allclose(out, ref_q, atol=2e-3, rtol=2e-3), err_q

    # Loose check: kernel vs. the original full-f32 module semantics; slack
    # covers the bf16 weight quantization of the five hidden linears.
    ref = f_nn_reference(x, params)
    err = float(jnp.max(jnp.abs(out - ref)))
    assert jnp.allclose(out, ref, atol=5e-2, rtol=5e-2), err

    print("KERNEL_OK")
</pallas_src>

<mosaic_0001>
module attributes {stable_mosaic.version = 11 : i64} {
  func.func @f_nn_kernel(%arg0: memref<8x8xf32, #tpu.memory_space<vmem>>, %arg1: memref<8x128xf32, #tpu.memory_space<vmem>>, %arg2: memref<5x128x128xbf16, #tpu.memory_space<any>>, %arg3: memref<12x128xf32, #tpu.memory_space<vmem>>, %arg4: memref<128x5xf32, #tpu.memory_space<vmem>>, %arg5: memref<1x5xf32, #tpu.memory_space<vmem>>, %arg6: memref<8x5xf32, #tpu.memory_space<vmem>>, %arg7: memref<5x128x128xbf16, #tpu.memory_space<vmem>>, %arg8: memref<5x!tpu.dma_semaphore, #tpu.memory_space<semaphore_mem>>) attributes {dimension_semantics = [], scalar_prefetch = 0 : i64, scratch_operands = 2 : i64, tpu.core_type = #tpu.core_type<tc>} {
    %c0_i32 = arith.constant 0 : i32
    %c0_i32_0 = arith.constant 0 : i32
    %c0_i32_1 = arith.constant 0 : i32
    %c0_i32_2 = arith.constant 0 : i32
    %c0_i32_3 = arith.constant 0 : i32
    %0 = tpu.memref_slice %arg2[%c0_i32, %c0_i32_2, %c0_i32_3] : memref<5x128x128xbf16, #tpu.memory_space<any>> -> memref<1x128x128xbf16, #tpu.memory_space<any>>
    %1 = tpu.memref_squeeze %0 : memref<1x128x128xbf16, #tpu.memory_space<any>> -> memref<128x128xbf16, #tpu.memory_space<any>>
    %c0_i32_4 = arith.constant 0 : i32
    %c0_i32_5 = arith.constant 0 : i32
    %2 = tpu.memref_slice %arg7[%c0_i32_0, %c0_i32_4, %c0_i32_5] : memref<5x128x128xbf16, #tpu.memory_space<vmem>> -> memref<1x128x128xbf16, #tpu.memory_space<vmem>>
    %3 = tpu.memref_squeeze %2 : memref<1x128x128xbf16, #tpu.memory_space<vmem>> -> memref<128x128xbf16, #tpu.memory_space<vmem>>
    %4 = tpu.memref_slice %arg8[%c0_i32_1] : memref<5x!tpu.dma_semaphore, #tpu.memory_space<semaphore_mem>> -> memref<1x!tpu.dma_semaphore, #tpu.memory_space<semaphore_mem>>
    %5 = tpu.memref_squeeze %4 : memref<1x!tpu.dma_semaphore, #tpu.memory_space<semaphore_mem>> -> memref<!tpu.dma_semaphore, #tpu.memory_space<semaphore_mem>>
    tpu.enqueue_dma source(%1 : memref<128x128xbf16, #tpu.memory_space<any>>) target(%3 : memref<128x128xbf16, #tpu.memory_space<vmem>>) target_semaphore(%5 : memref<!tpu.dma_semaphore, #tpu.memory_space<semaphore_mem>>)
    %c1_i32 = arith.constant 1 : i32
    %c1_i32_6 = arith.constant 1 : i32
    %c1_i32_7 = arith.constant 1 : i32
    %c0_i32_8 = arith.constant 0 : i32
    %c0_i32_9 = arith.constant 0 : i32
    %6 = tpu.memref_slice %arg2[%c1_i32, %c0_i32_8, %c0_i32_9] : memref<5x128x128xbf16, #tpu.memory_space<any>> -> memref<1x128x128xbf16, #tpu.memory_space<any>>
    %7 = tpu.memref_squeeze %6 : memref<1x128x128xbf16, #tpu.memory_space<any>> -> memref<128x128xbf16, #tpu.memory_space<any>>
    %c0_i32_10 = arith.constant 0 : i32
    %c0_i32_11 = arith.constant 0 : i32
    %8 = tpu.memref_slice %arg7[%c1_i32_6, %c0_i32_10, %c0_i32_11] : memref<5x128x128xbf16, #tpu.memory_space<vmem>> -> memref<1x128x128xbf16, #tpu.memory_space<vmem>>
    %9 = tpu.memref_squeeze %8 : memref<1x128x128xbf16, #tpu.memory_space<vmem>> -> memref<128x128xbf16, #tpu.memory_space<vmem>>
    %10 = tpu.memref_slice %arg8[%c1_i32_7] : memref<5x!tpu.dma_semaphore, #tpu.memory_space<semaphore_mem>> -> memref<1x!tpu.dma_semaphore, #tpu.memory_space<semaphore_mem>>
    %11 = tpu.memref_squeeze %10 : memref<1x!tpu.dma_semaphore, #tpu.memory_space<semaphore_mem>> -> memref<!tpu.dma_semaphore, #tpu.memory_space<semaphore_mem>>
    tpu.enqueue_dma source(%7 : memref<128x128xbf16, #tpu.memory_space<any>>) target(%9 : memref<128x128xbf16, #tpu.memory_space<vmem>>) target_semaphore(%11 : memref<!tpu.dma_semaphore, #tpu.memory_space<semaphore_mem>>)
    %c2_i32 = arith.constant 2 : i32
    %c2_i32_12 = arith.constant 2 : i32
    %c2_i32_13 = arith.constant 2 : i32
    %c0_i32_14 = arith.constant 0 : i32
    %c0_i32_15 = arith.constant 0 : i32
    %12 = tpu.memref_slice %arg2[%c2_i32, %c0_i32_14, %c0_i32_15] : memref<5x128x128xbf16, #tpu.memory_space<any>> -> memref<1x128x128xbf16, #tpu.memory_space<any>>
    %13 = tpu.memref_squeeze %12 : memref<1x128x128xbf16, #tpu.memory_space<any>> -> memref<128x128xbf16, #tpu.memory_space<any>>
    %c0_i32_16 = arith.constant 0 : i32
    %c0_i32_17 = arith.constant 0 : i32
    %14 = tpu.memref_slice %arg7[%c2_i32_12, %c0_i32_16, %c0_i32_17] : memref<5x128x128xbf16, #tpu.memory_space<vmem>> -> memref<1x128x128xbf16, #tpu.memory_space<vmem>>
    %15 = tpu.memref_squeeze %14 : memref<1x128x128xbf16, #tpu.memory_space<vmem>> -> memref<128x128xbf16, #tpu.memory_space<vmem>>
    %16 = tpu.memref_slice %arg8[%c2_i32_13] : memref<5x!tpu.dma_semaphore, #tpu.memory_space<semaphore_mem>> -> memref<1x!tpu.dma_semaphore, #tpu.memory_space<semaphore_mem>>
    %17 = tpu.memref_squeeze %16 : memref<1x!tpu.dma_semaphore, #tpu.memory_space<semaphore_mem>> -> memref<!tpu.dma_semaphore, #tpu.memory_space<semaphore_mem>>
    tpu.enqueue_dma source(%13 : memref<128x128xbf16, #tpu.memory_space<any>>) target(%15 : memref<128x128xbf16, #tpu.memory_space<vmem>>) target_semaphore(%17 : memref<!tpu.dma_semaphore, #tpu.memory_space<semaphore_mem>>)
    %c3_i32 = arith.constant 3 : i32
    %c3_i32_18 = arith.constant 3 : i32
    %c3_i32_19 = arith.constant 3 : i32
    %c0_i32_20 = arith.constant 0 : i32
    %c0_i32_21 = arith.constant 0 : i32
    %18 = tpu.memref_slice %arg2[%c3_i32, %c0_i32_20, %c0_i32_21] : memref<5x128x128xbf16, #tpu.memory_space<any>> -> memref<1x128x128xbf16, #tpu.memory_space<any>>
    %19 = tpu.memref_squeeze %18 : memref<1x128x128xbf16, #tpu.memory_space<any>> -> memref<128x128xbf16, #tpu.memory_space<any>>
    %c0_i32_22 = arith.constant 0 : i32
    %c0_i32_23 = arith.constant 0 : i32
    %20 = tpu.memref_slice %arg7[%c3_i32_18, %c0_i32_22, %c0_i32_23] : memref<5x128x128xbf16, #tpu.memory_space<vmem>> -> memref<1x128x128xbf16, #tpu.memory_space<vmem>>
    %21 = tpu.memref_squeeze %20 : memref<1x128x128xbf16, #tpu.memory_space<vmem>> -> memref<128x128xbf16, #tpu.memory_space<vmem>>
    %22 = tpu.memref_slice %arg8[%c3_i32_19] : memref<5x!tpu.dma_semaphore, #tpu.memory_space<semaphore_mem>> -> memref<1x!tpu.dma_semaphore, #tpu.memory_space<semaphore_mem>>
    %23 = tpu.memref_squeeze %22 : memref<1x!tpu.dma_semaphore, #tpu.memory_space<semaphore_mem>> -> memref<!tpu.dma_semaphore, #tpu.memory_space<semaphore_mem>>
    tpu.enqueue_dma source(%19 : memref<128x128xbf16, #tpu.memory_space<any>>) target(%21 : memref<128x128xbf16, #tpu.memory_space<vmem>>) target_semaphore(%23 : memref<!tpu.dma_semaphore, #tpu.memory_space<semaphore_mem>>)
    %c4_i32 = arith.constant 4 : i32
    %c4_i32_24 = arith.constant 4 : i32
    %c4_i32_25 = arith.constant 4 : i32
    %c0_i32_26 = arith.constant 0 : i32
    %c0_i32_27 = arith.constant 0 : i32
    %24 = tpu.memref_slice %arg2[%c4_i32, %c0_i32_26, %c0_i32_27] : memref<5x128x128xbf16, #tpu.memory_space<any>> -> memref<1x128x128xbf16, #tpu.memory_space<any>>
    %25 = tpu.memref_squeeze %24 : memref<1x128x128xbf16, #tpu.memory_space<any>> -> memref<128x128xbf16, #tpu.memory_space<any>>
    %c0_i32_28 = arith.constant 0 : i32
    %c0_i32_29 = arith.constant 0 : i32
    %26 = tpu.memref_slice %arg7[%c4_i32_24, %c0_i32_28, %c0_i32_29] : memref<5x128x128xbf16, #tpu.memory_space<vmem>> -> memref<1x128x128xbf16, #tpu.memory_space<vmem>>
    %27 = tpu.memref_squeeze %26 : memref<1x128x128xbf16, #tpu.memory_space<vmem>> -> memref<128x128xbf16, #tpu.memory_space<vmem>>
    %28 = tpu.memref_slice %arg8[%c4_i32_25] : memref<5x!tpu.dma_semaphore, #tpu.memory_space<semaphore_mem>> -> memref<1x!tpu.dma_semaphore, #tpu.memory_space<semaphore_mem>>
    %29 = tpu.memref_squeeze %28 : memref<1x!tpu.dma_semaphore, #tpu.memory_space<semaphore_mem>> -> memref<!tpu.dma_semaphore, #tpu.memory_space<semaphore_mem>>
    tpu.enqueue_dma source(%25 : memref<128x128xbf16, #tpu.memory_space<any>>) target(%27 : memref<128x128xbf16, #tpu.memory_space<vmem>>) target_semaphore(%29 : memref<!tpu.dma_semaphore, #tpu.memory_space<semaphore_mem>>)
    %c0 = arith.constant 0 : index
    %c0_30 = arith.constant 0 : index
    %30 = vector.load %arg0[%c0, %c0_30] : memref<8x8xf32, #tpu.memory_space<vmem>>, vector<8x8xf32>
    %c0_31 = arith.constant 0 : index
    %c0_32 = arith.constant 0 : index
    %31 = vector.load %arg1[%c0_31, %c0_32] : memref<8x128xf32, #tpu.memory_space<vmem>>, vector<8x128xf32>
    %cst = arith.constant dense<0.000000e+00> : vector<8x128xf32>
    %32 = tpu.matmul %30, %31, %cst {dimension_numbers = #tpu.dot_dimension_numbers<[1], [0], [0], [1], [0, 0, 1, 1], [], []>} : vector<8x8xf32>, vector<8x128xf32>, vector<8x128xf32> -> vector<8x128xf32>
    %c0_33 = arith.constant 0 : index
    %c0_34 = arith.constant 0 : index
    %33 = vector.load %arg3[%c0_33, %c0_34] : memref<12x128xf32, #tpu.memory_space<vmem>>, vector<1x128xf32>
    %c1 = arith.constant 1 : index
    %c0_35 = arith.constant 0 : index
    %34 = vector.load %arg3[%c1, %c0_35] : memref<12x128xf32, #tpu.memory_space<vmem>>, vector<1x128xf32>
    %cst_36 = arith.constant dense<0.000000e+00> : vector<128xf32>
    %35 = vector.multi_reduction <add>, %32, %cst_36 [0] : vector<8x128xf32> to vector<128xf32>
    %36 = vector.shape_cast %35 : vector<128xf32> to vector<1x128xf32>
    %37 = arith.mulf %32, %32 : vector<8x128xf32>
    %cst_37 = arith.constant dense<0.000000e+00> : vector<128xf32>
    %38 = vector.multi_reduction <add>, %37, %cst_37 [0] : vector<8x128xf32> to vector<128xf32>
    %39 = vector.shape_cast %38 : vector<128xf32> to vector<1x128xf32>
    %cst_38 = arith.constant 1.250000e-01 : f32
    %40 = vector.broadcast %cst_38 : f32 to vector<1x128xf32>
    %41 = arith.mulf %36, %40 : vector<1x128xf32>
    %cst_39 = arith.constant 1.250000e-01 : f32
    %42 = vector.broadcast %cst_39 : f32 to vector<1x128xf32>
    %43 = arith.mulf %39, %42 : vector<1x128xf32>
    %44 = arith.mulf %41, %41 : vector<1x128xf32>
    %45 = arith.subf %43, %44 : vector<1x128xf32>
    %cst_40 = arith.constant 0.000000e+00 : f32
    %46 = vector.broadcast %cst_40 : f32 to vector<1x128xf32>
    %47 = arith.maximumf %45, %46 : vector<1x128xf32>
    %cst_41 = arith.constant 9.99999974E-6 : f32
    %48 = vector.broadcast %cst_41 : f32 to vector<1x128xf32>
    %49 = arith.addf %47, %48 : vector<1x128xf32>
    %50 = math.rsqrt %49 : vector<1x128xf32>
    %51 = arith.mulf %33, %50 : vector<1x128xf32>
    %52 = arith.mulf %41, %51 : vector<1x128xf32>
    %53 = arith.subf %34, %52 : vector<1x128xf32>
    %54 = vector.broadcast %51 : vector<1x128xf32> to vector<8x128xf32>
    %55 = arith.mulf %32, %54 : vector<8x128xf32>
    %56 = vector.broadcast %53 : vector<1x128xf32> to vector<8x128xf32>
    %57 = arith.addf %55, %56 : vector<8x128xf32>
    %cst_42 = arith.constant 0.000000e+00 : f32
    %58 = vector.broadcast %cst_42 : f32 to vector<8x128xf32>
    %59 = arith.cmpf oge, %57, %58 : vector<8x128xf32>
    %cst_43 = arith.constant 1.000000e-01 : f32
    %60 = vector.broadcast %cst_43 : f32 to vector<8x128xf32>
    %61 = arith.mulf %60, %57 : vector<8x128xf32>
    %62 = arith.select %59, %57, %61 : vector<8x128xi1>, vector<8x128xf32>
    %c0_i32_44 = arith.constant 0 : i32
    %c0_i32_45 = arith.constant 0 : i32
    %c0_i32_46 = arith.constant 0 : i32
    %c0_i32_47 = arith.constant 0 : i32
    %c0_i32_48 = arith.constant 0 : i32
    %63 = tpu.memref_slice %arg2[%c0_i32_44, %c0_i32_47, %c0_i32_48] : memref<5x128x128xbf16, #tpu.memory_space<any>> -> memref<1x128x128xbf16, #tpu.memory_space<any>>
    %64 = tpu.memref_squeeze %63 : memref<1x128x128xbf16, #tpu.memory_space<any>> -> memref<128x128xbf16, #tpu.memory_space<any>>
    %c0_i32_49 = arith.constant 0 : i32
    %c0_i32_50 = arith.constant 0 : i32
    %65 = tpu.memref_slice %arg7[%c0_i32_45, %c0_i32_49, %c0_i32_50] : memref<5x128x128xbf16, #tpu.memory_space<vmem>> -> memref<1x128x128xbf16, #tpu.memory_space<vmem>>
    %66 = tpu.memref_squeeze %65 : memref<1x128x128xbf16, #tpu.memory_space<vmem>> -> memref<128x128xbf16, #tpu.memory_space<vmem>>
    %67 = tpu.memref_slice %arg8[%c0_i32_46] : memref<5x!tpu.dma_semaphore, #tpu.memory_space<semaphore_mem>> -> memref<1x!tpu.dma_semaphore, #tpu.memory_space<semaphore_mem>>
    %68 = tpu.memref_squeeze %67 : memref<1x!tpu.dma_semaphore, #tpu.memory_space<semaphore_mem>> -> memref<!tpu.dma_semaphore, #tpu.memory_space<semaphore_mem>>
    tpu.wait_dma2 semaphore(%68 : memref<!tpu.dma_semaphore, #tpu.memory_space<semaphore_mem>>) src(%64 : memref<128x128xbf16, #tpu.memory_space<any>>) dst(%66 : memref<128x128xbf16, #tpu.memory_space<vmem>>)
    %69 = arith.truncf %62 : vector<8x128xf32> to vector<8x128xbf16>
    %c0_51 = arith.constant 0 : index
    %c0_52 = arith.constant 0 : index
    %c0_53 = arith.constant 0 : index
    %70 = vector.load %arg7[%c0_51, %c0_52, %c0_53] : memref<5x128x128xbf16, #tpu.memory_space<vmem>>, vector<1x128x128xbf16>
    %71 = vector.shape_cast %70 : vector<1x128x128xbf16> to vector<128x128xbf16>
    %cst_54 = arith.constant dense<0.000000e+00> : vector<8x128xf32>
    %72 = tpu.matmul %69, %71, %cst_54 {dimension_numbers = #tpu.dot_dimension_numbers<[1], [0], [0], [1], [0, 0, 1, 1], [], []>} : vector<8x128xbf16>, vector<128x128xbf16>, vector<8x128xf32> -> vector<8x128xf32>
    %c2 = arith.constant 2 : index
    %c0_55 = arith.constant 0 : index
    %73 = vector.load %arg3[%c2, %c0_55] : memref<12x128xf32, #tpu.memory_space<vmem>>, vector<1x128xf32>
    %c3 = arith.constant 3 : index
    %c0_56 = arith.constant 0 : index
    %74 = vector.load %arg3[%c3, %c0_56] : memref<12x128xf32, #tpu.memory_space<vmem>>, vector<1x128xf32>
    %cst_57 = arith.constant dense<0.000000e+00> : vector<128xf32>
    %75 = vector.multi_reduction <add>, %72, %cst_57 [0] : vector<8x128xf32> to vector<128xf32>
    %76 = vector.shape_cast %75 : vector<128xf32> to vector<1x128xf32>
    %77 = arith.mulf %72, %72 : vector<8x128xf32>
    %cst_58 = arith.constant dense<0.000000e+00> : vector<128xf32>
    %78 = vector.multi_reduction <add>, %77, %cst_58 [0] : vector<8x128xf32> to vector<128xf32>
    %79 = vector.shape_cast %78 : vector<128xf32> to vector<1x128xf32>
    %cst_59 = arith.constant 1.250000e-01 : f32
    %80 = vector.broadcast %cst_59 : f32 to vector<1x128xf32>
    %81 = arith.mulf %76, %80 : vector<1x128xf32>
    %cst_60 = arith.constant 1.250000e-01 : f32
    %82 = vector.broadcast %cst_60 : f32 to vector<1x128xf32>
    %83 = arith.mulf %79, %82 : vector<1x128xf32>
    %84 = arith.mulf %81, %81 : vector<1x128xf32>
    %85 = arith.subf %83, %84 : vector<1x128xf32>
    %cst_61 = arith.constant 0.000000e+00 : f32
    %86 = vector.broadcast %cst_61 : f32 to vector<1x128xf32>
    %87 = arith.maximumf %85, %86 : vector<1x128xf32>
    %cst_62 = arith.constant 9.99999974E-6 : f32
    %88 = vector.broadcast %cst_62 : f32 to vector<1x128xf32>
    %89 = arith.addf %87, %88 : vector<1x128xf32>
    %90 = math.rsqrt %89 : vector<1x128xf32>
    %91 = arith.mulf %73, %90 : vector<1x128xf32>
    %92 = arith.mulf %81, %91 : vector<1x128xf32>
    %93 = arith.subf %74, %92 : vector<1x128xf32>
    %94 = vector.broadcast %91 : vector<1x128xf32> to vector<8x128xf32>
    %95 = arith.mulf %72, %94 : vector<8x128xf32>
    %96 = vector.broadcast %93 : vector<1x128xf32> to vector<8x128xf32>
    %97 = arith.addf %95, %96 : vector<8x128xf32>
    %98 = arith.addf %97, %57 : vector<8x128xf32>
    %cst_63 = arith.constant 0.000000e+00 : f32
    %99 = vector.broadcast %cst_63 : f32 to vector<8x128xf32>
    %100 = arith.cmpf oge, %98, %99 : vector<8x128xf32>
    %cst_64 = arith.constant 1.000000e-01 : f32
    %101 = vector.broadcast %cst_64 : f32 to vector<8x128xf32>
    %102 = arith.mulf %101, %98 : vector<8x128xf32>
    %103 = arith.select %100, %98, %102 : vector<8x128xi1>, vector<8x128xf32>
    %c1_i32_65 = arith.constant 1 : i32
    %c1_i32_66 = arith.constant 1 : i32
    %c1_i32_67 = arith.constant 1 : i32
    %c0_i32_68 = arith.constant 0 : i32
    %c0_i32_69 = arith.constant 0 : i32
    %104 = tpu.memref_slice %arg2[%c1_i32_65, %c0_i32_68, %c0_i32_69] : memref<5x128x128xbf16, #tpu.memory_space<any>> -> memref<1x128x128xbf16, #tpu.memory_space<any>>
    %105 = tpu.memref_squeeze %104 : memref<1x128x128xbf16, #tpu.memory_space<any>> -> memref<128x128xbf16, #tpu.memory_space<any>>
    %c0_i32_70 = arith.constant 0 : i32
    %c0_i32_71 = arith.constant 0 : i32
    %106 = tpu.memref_slice %arg7[%c1_i32_66, %c0_i32_70, %c0_i32_71] : memref<5x128x128xbf16, #tpu.memory_space<vmem>> -> memref<1x128x128xbf16, #tpu.memory_space<vmem>>
    %107 = tpu.memref_squeeze %106 : memref<1x128x128xbf16, #tpu.memory_space<vmem>> -> memref<128x128xbf16, #tpu.memory_space<vmem>>
    %108 = tpu.memref_slice %arg8[%c1_i32_67] : memref<5x!tpu.dma_semaphore, #tpu.memory_space<semaphore_mem>> -> memref<1x!tpu.dma_semaphore, #tpu.memory_space<semaphore_mem>>
    %109 = tpu.memref_squeeze %108 : memref<1x!tpu.dma_semaphore, #tpu.memory_space<semaphore_mem>> -> memref<!tpu.dma_semaphore, #tpu.memory_space<semaphore_mem>>
    tpu.wait_dma2 semaphore(%109 : memref<!tpu.dma_semaphore, #tpu.memory_space<semaphore_mem>>) src(%105 : memref<128x128xbf16, #tpu.memory_space<any>>) dst(%107 : memref<128x128xbf16, #tpu.memory_space<vmem>>)
    %110 = arith.truncf %103 : vector<8x128xf32> to vector<8x128xbf16>
    %c1_72 = arith.constant 1 : index
    %c0_73 = arith.constant 0 : index
    %c0_74 = arith.constant 0 : index
    %111 = vector.load %arg7[%c1_72, %c0_73, %c0_74] : memref<5x128x128xbf16, #tpu.memory_space<vmem>>, vector<1x128x128xbf16>
    %112 = vector.shape_cast %111 : vector<1x128x128xbf16> to vector<128x128xbf16>
    %cst_75 = arith.constant dense<0.000000e+00> : vector<8x128xf32>
    %113 = tpu.matmul %110, %112, %cst_75 {dimension_numbers = #tpu.dot_dimension_numbers<[1], [0], [0], [1], [0, 0, 1, 1], [], []>} : vector<8x128xbf16>, vector<128x128xbf16>, vector<8x128xf32> -> vector<8x128xf32>
    %c4 = arith.constant 4 : index
    %c0_76 = arith.constant 0 : index
    %114 = vector.load %arg3[%c4, %c0_76] : memref<12x128xf32, #tpu.memory_space<vmem>>, vector<1x128xf32>
    %c5 = arith.constant 5 : index
    %c0_77 = arith.constant 0 : index
    %115 = vector.load %arg3[%c5, %c0_77] : memref<12x128xf32, #tpu.memory_space<vmem>>, vector<1x128xf32>
    %cst_78 = arith.constant dense<0.000000e+00> : vector<128xf32>
    %116 = vector.multi_reduction <add>, %113, %cst_78 [0] : vector<8x128xf32> to vector<128xf32>
    %117 = vector.shape_cast %116 : vector<128xf32> to vector<1x128xf32>
    %118 = arith.mulf %113, %113 : vector<8x128xf32>
    %cst_79 = arith.constant dense<0.000000e+00> : vector<128xf32>
    %119 = vector.multi_reduction <add>, %118, %cst_79 [0] : vector<8x128xf32> to vector<128xf32>
    %120 = vector.shape_cast %119 : vector<128xf32> to vector<1x128xf32>
    %cst_80 = arith.constant 1.250000e-01 : f32
    %121 = vector.broadcast %cst_80 : f32 to vector<1x128xf32>
    %122 = arith.mulf %117, %121 : vector<1x128xf32>
    %cst_81 = arith.constant 1.250000e-01 : f32
    %123 = vector.broadcast %cst_81 : f32 to vector<1x128xf32>
    %124 = arith.mulf %120, %123 : vector<1x128xf32>
    %125 = arith.mulf %122, %122 : vector<1x128xf32>
    %126 = arith.subf %124, %125 : vector<1x128xf32>
    %cst_82 = arith.constant 0.000000e+00 : f32
    %127 = vector.broadcast %cst_82 : f32 to vector<1x128xf32>
    %128 = arith.maximumf %126, %127 : vector<1x128xf32>
    %cst_83 = arith.constant 9.99999974E-6 : f32
    %129 = vector.broadcast %cst_83 : f32 to vector<1x128xf32>
    %130 = arith.addf %128, %129 : vector<1x128xf32>
    %131 = math.rsqrt %130 : vector<1x128xf32>
    %132 = arith.mulf %114, %131 : vector<1x128xf32>
    %133 = arith.mulf %122, %132 : vector<1x128xf32>
    %134 = arith.subf %115, %133 : vector<1x128xf32>
    %135 = vector.broadcast %132 : vector<1x128xf32> to vector<8x128xf32>
    %136 = arith.mulf %113, %135 : vector<8x128xf32>
    %137 = vector.broadcast %134 : vector<1x128xf32> to vector<8x128xf32>
    %138 = arith.addf %136, %137 : vector<8x128xf32>
    %cst_84 = arith.constant 0.000000e+00 : f32
    %139 = vector.broadcast %cst_84 : f32 to vector<8x128xf32>
    %140 = arith.cmpf oge, %138, %139 : vector<8x128xf32>
    %cst_85 = arith.constant 1.000000e-01 : f32
    %141 = vector.broadcast %cst_85 : f32 to vector<8x128xf32>
    %142 = arith.mulf %141, %138 : vector<8x128xf32>
    %143 = arith.select %140, %138, %142 : vector<8x128xi1>, vector<8x128xf32>
    %c2_i32_86 = arith.constant 2 : i32
    %c2_i32_87 = arith.constant 2 : i32
    %c2_i32_88 = arith.constant 2 : i32
    %c0_i32_89 = arith.constant 0 : i32
    %c0_i32_90 = arith.constant 0 : i32
    %144 = tpu.memref_slice %arg2[%c2_i32_86, %c0_i32_89, %c0_i32_90] : memref<5x128x128xbf16, #tpu.memory_space<any>> -> memref<1x128x128xbf16, #tpu.memory_space<any>>
    %145 = tpu.memref_squeeze %144 : memref<1x128x128xbf16, #tpu.memory_space<any>> -> memref<128x128xbf16, #tpu.memory_space<any>>
    %c0_i32_91 = arith.constant 0 : i32
    %c0_i32_92 = arith.constant 0 : i32
    %146 = tpu.memref_slice %arg7[%c2_i32_87, %c0_i32_91, %c0_i32_92] : memref<5x128x128xbf16, #tpu.memory_space<vmem>> -> memref<1x128x128xbf16, #tpu.memory_space<vmem>>
    %147 = tpu.memref_squeeze %146 : memref<1x128x128xbf16, #tpu.memory_space<vmem>> -> memref<128x128xbf16, #tpu.memory_space<vmem>>
    %148 = tpu.memref_slice %arg8[%c2_i32_88] : memref<5x!tpu.dma_semaphore, #tpu.memory_space<semaphore_mem>> -> memref<1x!tpu.dma_semaphore, #tpu.memory_space<semaphore_mem>>
    %149 = tpu.memref_squeeze %148 : memref<1x!tpu.dma_semaphore, #tpu.memory_space<semaphore_mem>> -> memref<!tpu.dma_semaphore, #tpu.memory_space<semaphore_mem>>
    tpu.wait_dma2 semaphore(%149 : memref<!tpu.dma_semaphore, #tpu.memory_space<semaphore_mem>>) src(%145 : memref<128x128xbf16, #tpu.memory_space<any>>) dst(%147 : memref<128x128xbf16, #tpu.memory_space<vmem>>)
    %150 = arith.truncf %143 : vector<8x128xf32> to vector<8x128xbf16>
    %c2_93 = arith.constant 2 : index
    %c0_94 = arith.constant 0 : index
    %c0_95 = arith.constant 0 : index
    %151 = vector.load %arg7[%c2_93, %c0_94, %c0_95] : memref<5x128x128xbf16, #tpu.memory_space<vmem>>, vector<1x128x128xbf16>
    %152 = vector.shape_cast %151 : vector<1x128x128xbf16> to vector<128x128xbf16>
    %cst_96 = arith.constant dense<0.000000e+00> : vector<8x128xf32>
    %153 = tpu.matmul %150, %152, %cst_96 {dimension_numbers = #tpu.dot_dimension_numbers<[1], [0], [0], [1], [0, 0, 1, 1], [], []>} : vector<8x128xbf16>, vector<128x128xbf16>, vector<8x128xf32> -> vector<8x128xf32>
    %c6 = arith.constant 6 : index
    %c0_97 = arith.constant 0 : index
    %154 = vector.load %arg3[%c6, %c0_97] : memref<12x128xf32, #tpu.memory_space<vmem>>, vector<1x128xf32>
    %c7 = arith.constant 7 : index
    %c0_98 = arith.constant 0 : index
    %155 = vector.load %arg3[%c7, %c0_98] : memref<12x128xf32, #tpu.memory_space<vmem>>, vector<1x128xf32>
    %cst_99 = arith.constant dense<0.000000e+00> : vector<128xf32>
    %156 = vector.multi_reduction <add>, %153, %cst_99 [0] : vector<8x128xf32> to vector<128xf32>
    %157 = vector.shape_cast %156 : vector<128xf32> to vector<1x128xf32>
    %158 = arith.mulf %153, %153 : vector<8x128xf32>
    %cst_100 = arith.constant dense<0.000000e+00> : vector<128xf32>
    %159 = vector.multi_reduction <add>, %158, %cst_100 [0] : vector<8x128xf32> to vector<128xf32>
    %160 = vector.shape_cast %159 : vector<128xf32> to vector<1x128xf32>
    %cst_101 = arith.constant 1.250000e-01 : f32
    %161 = vector.broadcast %cst_101 : f32 to vector<1x128xf32>
    %162 = arith.mulf %157, %161 : vector<1x128xf32>
    %cst_102 = arith.constant 1.250000e-01 : f32
    %163 = vector.broadcast %cst_102 : f32 to vector<1x128xf32>
    %164 = arith.mulf %160, %163 : vector<1x128xf32>
    %165 = arith.mulf %162, %162 : vector<1x128xf32>
    %166 = arith.subf %164, %165 : vector<1x128xf32>
    %cst_103 = arith.constant 0.000000e+00 : f32
    %167 = vector.broadcast %cst_103 : f32 to vector<1x128xf32>
    %168 = arith.maximumf %166, %167 : vector<1x128xf32>
    %cst_104 = arith.constant 9.99999974E-6 : f32
    %169 = vector.broadcast %cst_104 : f32 to vector<1x128xf32>
    %170 = arith.addf %168, %169 : vector<1x128xf32>
    %171 = math.rsqrt %170 : vector<1x128xf32>
    %172 = arith.mulf %154, %171 : vector<1x128xf32>
    %173 = arith.mulf %162, %172 : vector<1x128xf32>
    %174 = arith.subf %155, %173 : vector<1x128xf32>
    %175 = vector.broadcast %172 : vector<1x128xf32> to vector<8x128xf32>
    %176 = arith.mulf %153, %175 : vector<8x128xf32>
    %177 = vector.broadcast %174 : vector<1x128xf32> to vector<8x128xf32>
    %178 = arith.addf %176, %177 : vector<8x128xf32>
    %179 = arith.addf %178, %103 : vector<8x128xf32>
    %cst_105 = arith.constant 0.000000e+00 : f32
    %180 = vector.broadcast %cst_105 : f32 to vector<8x128xf32>
    %181 = arith.cmpf oge, %179, %180 : vector<8x128xf32>
    %cst_106 = arith.constant 1.000000e-01 : f32
    %182 = vector.broadcast %cst_106 : f32 to vector<8x128xf32>
    %183 = arith.mulf %182, %179 : vector<8x128xf32>
    %184 = arith.select %181, %179, %183 : vector<8x128xi1>, vector<8x128xf32>
    %c3_i32_107 = arith.constant 3 : i32
    %c3_i32_108 = arith.constant 3 : i32
    %c3_i32_109 = arith.constant 3 : i32
    %c0_i32_110 = arith.constant 0 : i32
    %c0_i32_111 = arith.constant 0 : i32
    %185 = tpu.memref_slice %arg2[%c3_i32_107, %c0_i32_110, %c0_i32_111] : memref<5x128x128xbf16, #tpu.memory_space<any>> -> memref<1x128x128xbf16, #tpu.memory_space<any>>
    %186 = tpu.memref_squeeze %185 : memref<1x128x128xbf16, #tpu.memory_space<any>> -> memref<128x128xbf16, #tpu.memory_space<any>>
    %c0_i32_112 = arith.constant 0 : i32
    %c0_i32_113 = arith.constant 0 : i32
    %187 = tpu.memref_slice %arg7[%c3_i32_108, %c0_i32_112, %c0_i32_113] : memref<5x128x128xbf16, #tpu.memory_space<vmem>> -> memref<1x128x128xbf16, #tpu.memory_space<vmem>>
    %188 = tpu.memref_squeeze %187 : memref<1x128x128xbf16, #tpu.memory_space<vmem>> -> memref<128x128xbf16, #tpu.memory_space<vmem>>
    %189 = tpu.memref_slice %arg8[%c3_i32_109] : memref<5x!tpu.dma_semaphore, #tpu.memory_space<semaphore_mem>> -> memref<1x!tpu.dma_semaphore, #tpu.memory_space<semaphore_mem>>
    %190 = tpu.memref_squeeze %189 : memref<1x!tpu.dma_semaphore, #tpu.memory_space<semaphore_mem>> -> memref<!tpu.dma_semaphore, #tpu.memory_space<semaphore_mem>>
    tpu.wait_dma2 semaphore(%190 : memref<!tpu.dma_semaphore, #tpu.memory_space<semaphore_mem>>) src(%186 : memref<128x128xbf16, #tpu.memory_space<any>>) dst(%188 : memref<128x128xbf16, #tpu.memory_space<vmem>>)
    %191 = arith.truncf %184 : vector<8x128xf32> to vector<8x128xbf16>
    %c3_114 = arith.constant 3 : index
    %c0_115 = arith.constant 0 : index
    %c0_116 = arith.constant 0 : index
    %192 = vector.load %arg7[%c3_114, %c0_115, %c0_116] : memref<5x128x128xbf16, #tpu.memory_space<vmem>>, vector<1x128x128xbf16>
    %193 = vector.shape_cast %192 : vector<1x128x128xbf16> to vector<128x128xbf16>
    %cst_117 = arith.constant dense<0.000000e+00> : vector<8x128xf32>
    %194 = tpu.matmul %191, %193, %cst_117 {dimension_numbers = #tpu.dot_dimension_numbers<[1], [0], [0], [1], [0, 0, 1, 1], [], []>} : vector<8x128xbf16>, vector<128x128xbf16>, vector<8x128xf32> -> vector<8x128xf32>
    %c8 = arith.constant 8 : index
    %c0_118 = arith.constant 0 : index
    %195 = vector.load %arg3[%c8, %c0_118] : memref<12x128xf32, #tpu.memory_space<vmem>>, vector<1x128xf32>
    %c9 = arith.constant 9 : index
    %c0_119 = arith.constant 0 : index
    %196 = vector.load %arg3[%c9, %c0_119] : memref<12x128xf32, #tpu.memory_space<vmem>>, vector<1x128xf32>
    %cst_120 = arith.constant dense<0.000000e+00> : vector<128xf32>
    %197 = vector.multi_reduction <add>, %194, %cst_120 [0] : vector<8x128xf32> to vector<128xf32>
    %198 = vector.shape_cast %197 : vector<128xf32> to vector<1x128xf32>
    %199 = arith.mulf %194, %194 : vector<8x128xf32>
    %cst_121 = arith.constant dense<0.000000e+00> : vector<128xf32>
    %200 = vector.multi_reduction <add>, %199, %cst_121 [0] : vector<8x128xf32> to vector<128xf32>
    %201 = vector.shape_cast %200 : vector<128xf32> to vector<1x128xf32>
    %cst_122 = arith.constant 1.250000e-01 : f32
    %202 = vector.broadcast %cst_122 : f32 to vector<1x128xf32>
    %203 = arith.mulf %198, %202 : vector<1x128xf32>
    %cst_123 = arith.constant 1.250000e-01 : f32
    %204 = vector.broadcast %cst_123 : f32 to vector<1x128xf32>
    %205 = arith.mulf %201, %204 : vector<1x128xf32>
    %206 = arith.mulf %203, %203 : vector<1x128xf32>
    %207 = arith.subf %205, %206 : vector<1x128xf32>
    %cst_124 = arith.constant 0.000000e+00 : f32
    %208 = vector.broadcast %cst_124 : f32 to vector<1x128xf32>
    %209 = arith.maximumf %207, %208 : vector<1x128xf32>
    %cst_125 = arith.constant 9.99999974E-6 : f32
    %210 = vector.broadcast %cst_125 : f32 to vector<1x128xf32>
    %211 = arith.addf %209, %210 : vector<1x128xf32>
    %212 = math.rsqrt %211 : vector<1x128xf32>
    %213 = arith.mulf %195, %212 : vector<1x128xf32>
    %214 = arith.mulf %203, %213 : vector<1x128xf32>
    %215 = arith.subf %196, %214 : vector<1x128xf32>
    %216 = vector.broadcast %213 : vector<1x128xf32> to vector<8x128xf32>
    %217 = arith.mulf %194, %216 : vector<8x128xf32>
    %218 = vector.broadcast %215 : vector<1x128xf32> to vector<8x128xf32>
    %219 = arith.addf %217, %218 : vector<8x128xf32>
    %220 = arith.addf %219, %184 : vector<8x128xf32>
    %cst_126 = arith.constant 0.000000e+00 : f32
    %221 = vector.broadcast %cst_126 : f32 to vector<8x128xf32>
    %222 = arith.cmpf oge, %220, %221 : vector<8x128xf32>
    %cst_127 = arith.constant 1.000000e-01 : f32
    %223 = vector.broadcast %cst_127 : f32 to vector<8x128xf32>
    %224 = arith.mulf %223, %220 : vector<8x128xf32>
    %225 = arith.select %222, %220, %224 : vector<8x128xi1>, vector<8x128xf32>
    %c4_i32_128 = arith.constant 4 : i32
    %c4_i32_129 = arith.constant 4 : i32
    %c4_i32_130 = arith.constant 4 : i32
    %c0_i32_131 = arith.constant 0 : i32
    %c0_i32_132 = arith.constant 0 : i32
    %226 = tpu.memref_slice %arg2[%c4_i32_128, %c0_i32_131, %c0_i32_132] : memref<5x128x128xbf16, #tpu.memory_space<any>> -> memref<1x128x128xbf16, #tpu.memory_space<any>>
    %227 = tpu.memref_squeeze %226 : memref<1x128x128xbf16, #tpu.memory_space<any>> -> memref<128x128xbf16, #tpu.memory_space<any>>
    %c0_i32_133 = arith.constant 0 : i32
    %c0_i32_134 = arith.constant 0 : i32
    %228 = tpu.memref_slice %arg7[%c4_i32_129, %c0_i32_133, %c0_i32_134] : memref<5x128x128xbf16, #tpu.memory_space<vmem>> -> memref<1x128x128xbf16, #tpu.memory_space<vmem>>
    %229 = tpu.memref_squeeze %228 : memref<1x128x128xbf16, #tpu.memory_space<vmem>> -> memref<128x128xbf16, #tpu.memory_space<vmem>>
    %230 = tpu.memref_slice %arg8[%c4_i32_130] : memref<5x!tpu.dma_semaphore, #tpu.memory_space<semaphore_mem>> -> memref<1x!tpu.dma_semaphore, #tpu.memory_space<semaphore_mem>>
    %231 = tpu.memref_squeeze %230 : memref<1x!tpu.dma_semaphore, #tpu.memory_space<semaphore_mem>> -> memref<!tpu.dma_semaphore, #tpu.memory_space<semaphore_mem>>
    tpu.wait_dma2 semaphore(%231 : memref<!tpu.dma_semaphore, #tpu.memory_space<semaphore_mem>>) src(%227 : memref<128x128xbf16, #tpu.memory_space<any>>) dst(%229 : memref<128x128xbf16, #tpu.memory_space<vmem>>)
    %232 = arith.truncf %225 : vector<8x128xf32> to vector<8x128xbf16>
    %c4_135 = arith.constant 4 : index
    %c0_136 = arith.constant 0 : index
    %c0_137 = arith.constant 0 : index
    %233 = vector.load %arg7[%c4_135, %c0_136, %c0_137] : memref<5x128x128xbf16, #tpu.memory_space<vmem>>, vector<1x128x128xbf16>
    %234 = vector.shape_cast %233 : vector<1x128x128xbf16> to vector<128x128xbf16>
    %cst_138 = arith.constant dense<0.000000e+00> : vector<8x128xf32>
    %235 = tpu.matmul %232, %234, %cst_138 {dimension_numbers = #tpu.dot_dimension_numbers<[1], [0], [0], [1], [0, 0, 1, 1], [], []>} : vector<8x128xbf16>, vector<128x128xbf16>, vector<8x128xf32> -> vector<8x128xf32>
    %c10 = arith.constant 10 : index
    %c0_139 = arith.constant 0 : index
    %236 = vector.load %arg3[%c10, %c0_139] : memref<12x128xf32, #tpu.memory_space<vmem>>, vector<1x128xf32>
    %c11 = arith.constant 11 : index
    %c0_140 = arith.constant 0 : index
    %237 = vector.load %arg3[%c11, %c0_140] : memref<12x128xf32, #tpu.memory_space<vmem>>, vector<1x128xf32>
    %cst_141 = arith.constant dense<0.000000e+00> : vector<128xf32>
    %238 = vector.multi_reduction <add>, %235, %cst_141 [0] : vector<8x128xf32> to vector<128xf32>
    %239 = vector.shape_cast %238 : vector<128xf32> to vector<1x128xf32>
    %240 = arith.mulf %235, %235 : vector<8x128xf32>
    %cst_142 = arith.constant dense<0.000000e+00> : vector<128xf32>
    %241 = vector.multi_reduction <add>, %240, %cst_142 [0] : vector<8x128xf32> to vector<128xf32>
    %242 = vector.shape_cast %241 : vector<128xf32> to vector<1x128xf32>
    %cst_143 = arith.constant 1.250000e-01 : f32
    %243 = vector.broadcast %cst_143 : f32 to vector<1x128xf32>
    %244 = arith.mulf %239, %243 : vector<1x128xf32>
    %cst_144 = arith.constant 1.250000e-01 : f32
    %245 = vector.broadcast %cst_144 : f32 to vector<1x128xf32>
    %246 = arith.mulf %242, %245 : vector<1x128xf32>
    %247 = arith.mulf %244, %244 : vector<1x128xf32>
    %248 = arith.subf %246, %247 : vector<1x128xf32>
    %cst_145 = arith.constant 0.000000e+00 : f32
    %249 = vector.broadcast %cst_145 : f32 to vector<1x128xf32>
    %250 = arith.maximumf %248, %249 : vector<1x128xf32>
    %cst_146 = arith.constant 9.99999974E-6 : f32
    %251 = vector.broadcast %cst_146 : f32 to vector<1x128xf32>
    %252 = arith.addf %250, %251 : vector<1x128xf32>
    %253 = math.rsqrt %252 : vector<1x128xf32>
    %254 = arith.mulf %236, %253 : vector<1x128xf32>
    %255 = arith.mulf %244, %254 : vector<1x128xf32>
    %256 = arith.subf %237, %255 : vector<1x128xf32>
    %257 = vector.broadcast %254 : vector<1x128xf32> to vector<8x128xf32>
    %258 = arith.mulf %235, %257 : vector<8x128xf32>
    %259 = vector.broadcast %256 : vector<1x128xf32> to vector<8x128xf32>
    %260 = arith.addf %258, %259 : vector<8x128xf32>
    %cst_147 = arith.constant 0.000000e+00 : f32
    %261 = vector.broadcast %cst_147 : f32 to vector<8x128xf32>
    %262 = arith.cmpf oge, %260, %261 : vector<8x128xf32>
    %cst_148 = arith.constant 1.000000e-01 : f32
    %263 = vector.broadcast %cst_148 : f32 to vector<8x128xf32>
    %264 = arith.mulf %263, %260 : vector<8x128xf32>
    %265 = arith.select %262, %260, %264 : vector<8x128xi1>, vector<8x128xf32>
    %266 = arith.addf %265, %225 : vector<8x128xf32>
    %c0_149 = arith.constant 0 : index
    %c0_150 = arith.constant 0 : index
    %267 = vector.load %arg4[%c0_149, %c0_150] : memref<128x5xf32, #tpu.memory_space<vmem>>, vector<128x5xf32>
    %cst_151 = arith.constant dense<0.000000e+00> : vector<8x5xf32>
    %268 = tpu.matmul %266, %267, %cst_151 {dimension_numbers = #tpu.dot_dimension_numbers<[1], [0], [0], [1], [0, 0, 1, 1], [], []>} : vector<8x128xf32>, vector<128x5xf32>, vector<8x5xf32> -> vector<8x5xf32>
    %c0_152 = arith.constant 0 : index
    %c0_153 = arith.constant 0 : index
    %269 = vector.load %arg5[%c0_152, %c0_153] : memref<1x5xf32, #tpu.memory_space<vmem>>, vector<1x5xf32>
    %270 = vector.broadcast %269 : vector<1x5xf32> to vector<8x5xf32>
    %271 = arith.addf %268, %270 : vector<8x5xf32>
    %c0_154 = arith.constant 0 : index
    %c0_155 = arith.constant 0 : index
    %272 = vector.load %arg6[%c0_154, %c0_155] : memref<8x5xf32, #tpu.memory_space<vmem>>, vector<8x5xf32>
    tpu.vector_store %arg6[%c0_154, %c0_155], %271 {strides = array<i32>} : memref<8x5xf32, #tpu.memory_space<vmem>>, vector<8x5xf32>,
    return
  }
}

</mosaic_0001>

<bundles_post_ra>
// kernel: f_nn_forward.1
= control target key start
LH: loop header
LB: loop body
LE: loop exit
PB: predicated region body
PF: predicated region fallthrough
CT: control target
= control target key end

     0   :  { %vm92_vm0 = vcmask 64512   ;;  %v1533_v2 = vmov 0.0   ;;  %vm1534_vm1 = vmmov 0   ;;  %s1812_s0 = inlined_call_operand.vmem [shape: f32[8,8], index: 0, kind: input, shape index: {}]   ;;  %s1813_s1 = inlined_call_operand.vmem [shape: f32[8,128], index: 1, kind: input, shape index: {}]   ;;  %s1814_s2 = inlined_call_operand.hbm [shape: bf16[5,128,128], index: 2, kind: input, shape index: {}]   ;;  %s1815_s3 = inlined_call_operand.vmem [shape: f32[12,128], index: 3, kind: input, shape index: {}]   ;;  %s1816_s4 = inlined_call_operand.vmem [shape: f32[128,5], index: 4, kind: input, shape index: {}]   ;;  %s1817_s5 = inlined_call_operand.vmem [shape: f32[1,5], index: 5, kind: input, shape index: {}]   ;;  %s1818_s6 = inlined_call_operand.hbm [shape: f32[8,5], index: 6, kind: output, shape index: {}]  }
   0x1   :  { %v91_v0 = vld [vmem:[%s1813_s1] sm:$0xff]  ;;  %1189 = vmatprep.subr.mxu0 %v1533_v2  ;;  %1191 = vmatprep.mubr.msk.f32.mxu0 %vm1534_vm1, %v1533_v2 }
   0x2   :  { %v90_v1 = vld [vmem:[%s1812_s0] sm:$0xff] }
   0x3   :  { %11 = vsyncpa [#allocation5], 0  ;;  %1190 = vmatpush3.msra.mxu0 %v91_v0  ;;  %s1535_s25 = smov [#allocation2]   ;;  %s1536_s0 = smov [#allocation2 + $0x40]  }
   0x4   :  { %1192 = vmatmul.mubr.msk.f32.vlgmr.msra.gmra.mxu0 %vm92_vm0, %v90_v1  ;;  %s30_s26 = sshll.u32 %s1535_s25, 4  ;;  %s44_s1 = sshll.u32 %s1536_s0, 4  ;;  %s1585_s26 = int_to_ptr.vmem [resolvable:$true] %s30_s26  ;;  %s45_s1 = int_to_ptr.vmem [resolvable:$true] %s44_s1 }
   0x5   :  { %s1397_s27 = scalar_lea.vmem %s1585_s26, 1024  ;;  %s1590_s28 = scalar_lea.vmem %s1585_s26, 5120 }
   0x6   :  { %p1398_p0 = scmp.ne.s32.totalorder %s1585_s26, %s1397_s27  ;;  %p1402_p1 = scmp.lt.s32.totalorder %s1585_s26, %s1585_s26 }
   0x7   :  { %p1403_p2 = scmp.lt.s32.totalorder %s1590_s28, %s1397_s27 }
   0x9   :  { %p1404_p3 = por %p1403_p2, %p1402_p1 }
   0xb   :  { %p1405_p4 = pnand %p1404_p3, %p1398_p0 }
   0xd   :  { %1408 = shalt.err (!%p1405_p4)  }
   0xe   :  { %33 = dma.hbm_to_vmem [thread:$0]  %s1814_s2, 1024, %s1585_s26, [#allocation3] }
   0xf   :  { %s34_s9 = scalar_lea.hbm %s1814_s2, 1024  ;;  %s1419_s10 = scalar_lea.vmem %s45_s1, 1024 }
  0x10   :  { %p1420_p5 = scmp.ne.s32.totalorder %s45_s1, %s1419_s10  ;;  %p1424_p6 = scmp.lt.s32.totalorder %s45_s1, %s1585_s26 }
  0x11   :  { %p1425_p7 = scmp.lt.s32.totalorder %s1590_s28, %s1419_s10 }
  0x13   :  { %p1426_p8 = por %p1425_p7, %p1424_p6 }
  0x15   :  { %p1427_p9 = pnand %p1426_p8, %p1420_p5 }
  0x17   :  { %1430 = shalt.err (!%p1427_p9)  }
  0x18   :  { %47 = dma.hbm_to_vmem [thread:$0]  %s34_s9, 1024, %s45_s1, [#allocation3 + $0x1] }
  0x19   :  { %s48_s13 = scalar_lea.hbm %s1814_s2, 2048  ;;  %s1537_s14 = smov [#allocation2 + $0x80]  }
  0x1a   :  { %s58_s15 = sshll.u32 %s1537_s14, 4  ;;  %s62_s18 = scalar_lea.hbm %s1814_s2, 3072  ;;  %s59_s15 = int_to_ptr.vmem [resolvable:$true] %s58_s15 }
  0x1b   :  { %s1442_s19 = scalar_lea.vmem %s59_s15, 1024  ;;  %p1447_p11 = scmp.lt.s32.totalorder %s59_s15, %s1585_s26 }
  0x1c   :  { %p1443_p10 = scmp.ne.s32.totalorder %s59_s15, %s1442_s19  ;;  %p1448_p12 = scmp.lt.s32.totalorder %s1590_s28, %s1442_s19 }
  0x1e   :  { %p1449_p13 = por %p1448_p12, %p1447_p11 }
  0x20   :  { %p1450_p0 = pnand %p1449_p13, %p1443_p10 }
  0x22   :  { %1453 = shalt.err (!%p1450_p0)  }
  0x23   :  { %61 = dma.hbm_to_vmem [thread:$0]  %s48_s13, 1024, %s59_s15, [#allocation3 + $0x2] }
  0x24   :  { %s1538_s20 = smov [#allocation2 + $0xc0]   ;;  %s76_s24 = scalar_lea.hbm %s1814_s2, 4096 }
  0x25   :  { %s72_s21 = sshll.u32 %s1538_s20, 4  ;;  %s73_s21 = int_to_ptr.vmem [resolvable:$true] %s72_s21 }
  0x26   :  { %s1465_s25 = scalar_lea.vmem %s73_s21, 1024  ;;  %p1470_p2 = scmp.lt.s32.totalorder %s73_s21, %s1585_s26 }
  0x27   :  { %p1466_p1 = scmp.ne.s32.totalorder %s73_s21, %s1465_s25  ;;  %p1471_p3 = scmp.lt.s32.totalorder %s1590_s28, %s1465_s25 }
  0x29   :  { %p1472_p4 = por %p1471_p3, %p1470_p2 }
  0x2b   :  { %p1473_p5 = pnand %p1472_p4, %p1466_p1 }
  0x2d   :  { %1476 = shalt.err (!%p1473_p5)  }
  0x2e   :  { %75 = dma.hbm_to_vmem [thread:$0]  %s62_s18, 1024, %s73_s21, [#allocation3 + $0x3] }
  0x2f   :  { %s1539_s0 = smov [#allocation2 + $0x100]  }
  0x30   :  { %s86_s1 = sshll.u32 %s1539_s0, 4  ;;  %s87_s1 = int_to_ptr.vmem [resolvable:$true] %s86_s1 }
  0x31   :  { %s1488_s27 = scalar_lea.vmem %s87_s1, 1024  ;;  %p1493_p7 = scmp.lt.s32.totalorder %s87_s1, %s1585_s26 }
  0x32   :  { %p1489_p6 = scmp.ne.s32.totalorder %s87_s1, %s1488_s27  ;;  %p1494_p8 = scmp.lt.s32.totalorder %s1590_s28, %s1488_s27 }
  0x34   :  { %p1495_p9 = por %p1494_p8, %p1493_p7 }
  0x36   :  { %p1496_p10 = pnand %p1495_p9, %p1489_p6 }
  0x38   :  { %1499 = shalt.err (!%p1496_p10)  }
  0x39   :  { %89 = dma.hbm_to_vmem [thread:$0]  %s76_s24, 1024, %s87_s1, [#allocation3 + $0x4]  ;;  %v191_v24 = vlaneseq  ;;  %v166_v26 = vld [vmem:[%s1815_s3] sm:$0x1]  ;;  %v167_v30 = vld [vmem:[%s1815_s3 + $0x1] sm:$0x1] }
  0x3b   :  { %v192_v25 = vshrl.u32 %v191_v24, 7 }
  0x3d   :  { %v1622_v27 = vsub.s32 0, %v192_v25 }
  0xc4   :  { %v162_v3 = vpop.f32.mrf.mxu0 }
  0xc5   :  { %v168_v4 = vrot.slane %v162_v3, 4  ;;  %v174_v5 = vmul.f32 %v162_v3, %v162_v3 }
  0xc6   :  { %v1193_v6 = vpop.f32.mrf.mxu0 }
  0xc7   :  { %v169_v7 = vadd.f32 %v168_v4, %v162_v3  ;;  %v175_v8 = vrot.slane %v174_v5, 4 }
  0xc9   :  { %v170_v9 = vrot.slane %v169_v7, 2  ;;  %v176_v10 = vadd.f32 %v175_v8, %v174_v5 }
  0xcb   :  { %v171_v11 = vadd.f32 %v170_v9, %v169_v7  ;;  %v177_v12 = vrot.slane %v176_v10, 2 }
  0xcd   :  { %v172_v13 = vrot.slane %v171_v11, 1  ;;  %v178_v14 = vadd.f32 %v177_v12, %v176_v10 }
  0xcf   :  { %v173_v15 = vadd.f32 %v172_v13, %v171_v11  ;;  %v179_v16 = vrot.slane %v178_v14, 1 }
  0xd1   :  { %v180_v17 = vadd.f32 %v179_v16, %v178_v14  ;;  %v181_v18 = vmul.f32 0.125, %v173_v15 }
  0xd3   :  { %v182_v19 = vmul.f32 0.125, %v180_v17  ;;  %v183_v20 = vmul.f32 %v181_v18, %v181_v18 }
  0xd5   :  { %v184_v21 = vsub.f32 %v182_v19, %v183_v20 }
  0xd7   :  { %v185_v22 = vmax.f32 %v184_v21, 0.0 }
  0xd9   :  { %v186_v23 = vadd.f32 1e-05, %v185_v22 }
  0xdb   :  { %1337 = vrsqrt.f32 %v186_v23 }
  0xe8   :  { %v1338_v28 = vpop.eup %1337 }
  0xe9   :  { %v188_v29 = vmul.f32 %v1338_v28, %v166_v26 }
  0xeb   :  { %v189_v31 = vmul.f32 %v188_v29, %v181_v18  ;;  %v194_v32 = vrot.slane %v188_v29, %v1622_v27 }
  0xed   :  { %v190_v33 = vsub.f32 %v167_v30, %v189_v31  ;;  %v195_v34 = vmul.f32 %v194_v32, %v162_v3 }
  0xef   :  { %v199_v35 = vrot.slane %v190_v33, %v1622_v27 }
  0xf1   :  { %v1629_v36 = vadd.f32 %v199_v35, %v195_v34 }
  0xf3   :  { %vm201_vm2 = vcmp.ge.f32.partialorder %v1629_v36, 0.0  ;;  %v202_v37 = vmul.f32 0.1, %v1629_v36 }
  0xf5   :  { %v203_v38 = vsel %vm201_vm2, %v1629_v36, %v202_v37 }
  0xf6   :  { %1521 = dma.done.wait [#allocation3], 1024 }
  0xf7   :  { %1522 = vsyncadd [#allocation3], 4294966272  ;;  %1194 = vmatprep.subr.bf16.mxu1 %v1533_v2  ;;  %1210 = vmatprep.mubr.msk.bf16.mxu1 %vm1534_vm1, %v1533_v2  ;;  %v1339_v39 = vld [vmem:[#allocation2 + $0x38] sm:$0xff]   ;;  %v1340_v40 = vld [vmem:[#allocation2 + $0x30] sm:$0xff]   ;;  %v208_v47 = vpack.c.bf16 %v203_v38, %v203_v38 }
  0xf8   :  { %1195 = vmatpush3.bf16.msra.mxu1 %v1339_v39  ;;  %v1341_v41 = vld [vmem:[#allocation2 + $0x28] sm:$0xff]   ;;  %v1342_v42 = vld [vmem:[#allocation2 + $0x20] sm:$0xff]   ;;  %v1343_v43 = vld [vmem:[#allocation2 + $0x18] sm:$0xff]  }
  0xf9   :  { %1196 = vmatprep.subr.bf16.mxu1 %v1533_v2  ;;  %v1344_v44 = vld [vmem:[#allocation2 + $0x10] sm:$0xff]   ;;  %v1345_v45 = vld [vmem:[#allocation2 + $0x8] sm:$0xff]   ;;  %v1346_v46 = vld [vmem:[#allocation2] sm:$0xff]  }
  0xfa   :  { %v313_v8 = vld [vmem:[%s1815_s3 + $0x2] sm:$0x1]  ;;  %v314_v11 = vld [vmem:[%s1815_s3 + $0x3] sm:$0x1] }
  0xfc   :  { %1197 = vmatpush3.bf16.msra.mxu1 %v1340_v40 }
  0xfd   :  { %1198 = vmatprep.subr.bf16.mxu1 %v1533_v2 }
 0x100   :  { %1199 = vmatpush3.bf16.msra.mxu1 %v1341_v41 }
 0x101   :  { %1200 = vmatprep.subr.bf16.mxu1 %v1533_v2 }
 0x104   :  { %1201 = vmatpush3.bf16.msra.mxu1 %v1342_v42 }
 0x105   :  { %1202 = vmatprep.subr.bf16.mxu1 %v1533_v2 }
 0x108   :  { %1203 = vmatpush3.bf16.msra.mxu1 %v1343_v43 }
 0x109   :  { %1204 = vmatprep.subr.bf16.mxu1 %v1533_v2 }
 0x10c   :  { %1205 = vmatpush3.bf16.msra.mxu1 %v1344_v44 }
 0x10d   :  { %1206 = vmatprep.subr.bf16.mxu1 %v1533_v2 }
 0x110   :  { %1207 = vmatpush3.bf16.msra.mxu1 %v1345_v45 }
 0x111   :  { %1208 = vmatprep.subr.bf16.mxu1 %v1533_v2 }
 0x114   :  { %1209 = vmatpush3.bf16.msra.mxu1 %v1346_v46 }
 0x117   :  { %1211 = vmatmul.mubr.bf16.vlgmr.msra.gmra.mxu1 %v208_v47 }
 0x1d7   :  { %v307_v48 = vpop.f32.mrf.mxu1 }
 0x1d8   :  { %v315_v49 = vrot.slane %v307_v48, 4  ;;  %v321_v50 = vmul.f32 %v307_v48, %v307_v48 }
 0x1d9   :  { %v1212_v51 = vpop.f32.mrf.mxu1 }
 0x1da   :  { %v316_v52 = vadd.f32 %v315_v49, %v307_v48  ;;  %v322_v53 = vrot.slane %v321_v50, 4 }
 0x1db   :  { %v310_v54 = vpop.f32.mrf.mxu1 }
 0x1dc   :  { %v317_v55 = vrot.slane %v316_v52, 2  ;;  %v323_v56 = vadd.f32 %v322_v53, %v321_v50 }
 0x1dd   :  { %v1213_v57 = vpop.f32.mrf.mxu1 }
 0x1de   :  { %v318_v58 = vadd.f32 %v317_v55, %v316_v52  ;;  %v324_v59 = vrot.slane %v323_v56, 2 }
 0x1e0   :  { %v319_v60 = vrot.slane %v318_v58, 1  ;;  %v325_v61 = vadd.f32 %v324_v59, %v323_v56 }
 0x1e2   :  { %v320_v62 = vadd.f32 %v319_v60, %v318_v58  ;;  %v326_v63 = vrot.slane %v325_v61, 1 }
 0x1e4   :  { %v327_v0 = vadd.f32 %v326_v63, %v325_v61  ;;  %v328_v1 = vmul.f32 0.125, %v320_v62 }
 0x1e6   :  { %v329_v3 = vmul.f32 0.125, %v327_v0  ;;  %v330_v4 = vmul.f32 %v328_v1, %v328_v1 }
 0x1e8   :  { %v331_v5 = vsub.f32 %v329_v3, %v330_v4 }
 0x1ea   :  { %v332_v6 = vmax.f32 %v331_v5, 0.0 }
 0x1ec   :  { %v333_v7 = vadd.f32 1e-05, %v332_v6 }
 0x1ee   :  { %1347 = vrsqrt.f32 %v333_v7 }
 0x1fb   :  { %v1348_v9 = vpop.eup %1347 }
 0x1fc   :  { %v335_v10 = vmul.f32 %v1348_v9, %v313_v8 }
 0x1fe   :  { %v336_v12 = vmul.f32 %v335_v10, %v328_v1  ;;  %v341_v13 = vrot.slane %v335_v10, %v1622_v27 }
 0x200   :  { %v337_v14 = vsub.f32 %v314_v11, %v336_v12  ;;  %v342_v15 = vmul.f32 %v341_v13, %v307_v48 }
 0x202   :  { %v346_v16 = vrot.slane %v337_v14, %v1622_v27 }
 0x204   :  { %v347_v17 = vadd.f32 %v346_v16, %v342_v15 }
 0x206   :  { %v348_v18 = vadd.f32 %v347_v17, %v1629_v36 }
 0x208   :  { %vm349_vm3 = vcmp.ge.f32.partialorder %v348_v18, 0.0  ;;  %v350_v19 = vmul.f32 0.1, %v348_v18 }
 0x20a   :  { %v1653_v20 = vsel %vm349_vm3, %v348_v18, %v350_v19 }
 0x20b   :  { %1523 = dma.done.wait [#allocation3 + $0x1], 1024 }
 0x20c   :  { %1524 = vsyncadd [#allocation3 + $0x1], 4294966272  ;;  %1214 = vmatprep.subr.bf16.mxu0 %v1533_v2  ;;  %1230 = vmatprep.mubr.msk.bf16.mxu0 %vm1534_vm1, %v1533_v2  ;;  %v1349_v21 = vld [vmem:[#allocation2 + $0x78] sm:$0xff]   ;;  %v1350_v22 = vld [vmem:[#allocation2 + $0x70] sm:$0xff]   ;;  %v354_v30 = vpack.c.bf16 %v1653_v20, %v1653_v20 }
 0x20d   :  { %1215 = vmatpush3.bf16.msra.mxu0 %v1349_v21  ;;  %v1351_v23 = vld [vmem:[#allocation2 + $0x68] sm:$0xff]   ;;  %v1352_v24 = vld [vmem:[#allocation2 + $0x60] sm:$0xff]   ;;  %v1353_v25 = vld [vmem:[#allocation2 + $0x58] sm:$0xff]  }
 0x20e   :  { %1216 = vmatprep.subr.bf16.mxu0 %v1533_v2  ;;  %v1354_v26 = vld [vmem:[#allocation2 + $0x50] sm:$0xff]   ;;  %v1355_v28 = vld [vmem:[#allocation2 + $0x48] sm:$0xff]   ;;  %v1356_v29 = vld [vmem:[#allocation2 + $0x40] sm:$0xff]  }
 0x20f   :  { %v459_v54 = vld [vmem:[%s1815_s3 + $0x4] sm:$0x1]  ;;  %v460_v57 = vld [vmem:[%s1815_s3 + $0x5] sm:$0x1] }
 0x211   :  { %1217 = vmatpush3.bf16.msra.mxu0 %v1350_v22 }
 0x212   :  { %1218 = vmatprep.subr.bf16.mxu0 %v1533_v2 }
 0x215   :  { %1219 = vmatpush3.bf16.msra.mxu0 %v1351_v23 }
 0x216   :  { %1220 = vmatprep.subr.bf16.mxu0 %v1533_v2 }
 0x219   :  { %1221 = vmatpush3.bf16.msra.mxu0 %v1352_v24 }
 0x21a   :  { %1222 = vmatprep.subr.bf16.mxu0 %v1533_v2 }
 0x21d   :  { %1223 = vmatpush3.bf16.msra.mxu0 %v1353_v25 }
 0x21e   :  { %1224 = vmatprep.subr.bf16.mxu0 %v1533_v2 }
 0x221   :  { %1225 = vmatpush3.bf16.msra.mxu0 %v1354_v26 }
 0x222   :  { %1226 = vmatprep.subr.bf16.mxu0 %v1533_v2 }
 0x225   :  { %1227 = vmatpush3.bf16.msra.mxu0 %v1355_v28 }
 0x226   :  { %1228 = vmatprep.subr.bf16.mxu0 %v1533_v2 }
 0x229   :  { %1229 = vmatpush3.bf16.msra.mxu0 %v1356_v29 }
 0x22c   :  { %1231 = vmatmul.mubr.bf16.vlgmr.msra.gmra.mxu0 %v354_v30 }
 0x2ec   :  { %v453_v31 = vpop.f32.mrf.mxu0 }
 0x2ed   :  { %v461_v32 = vrot.slane %v453_v31, 4  ;;  %v467_v33 = vmul.f32 %v453_v31, %v453_v31 }
 0x2ee   :  { %v1232_v34 = vpop.f32.mrf.mxu0 }
 0x2ef   :  { %v462_v35 = vadd.f32 %v461_v32, %v453_v31  ;;  %v468_v36 = vrot.slane %v467_v33, 4 }
 0x2f0   :  { %v456_v37 = vpop.f32.mrf.mxu0 }
 0x2f1   :  { %v463_v38 = vrot.slane %v462_v35, 2  ;;  %v469_v39 = vadd.f32 %v468_v36, %v467_v33 }
 0x2f2   :  { %v1233_v40 = vpop.f32.mrf.mxu0 }
 0x2f3   :  { %v464_v41 = vadd.f32 %v463_v38, %v462_v35  ;;  %v470_v42 = vrot.slane %v469_v39, 2 }
 0x2f5   :  { %v465_v43 = vrot.slane %v464_v41, 1  ;;  %v471_v44 = vadd.f32 %v470_v42, %v469_v39 }
 0x2f7   :  { %v466_v45 = vadd.f32 %v465_v43, %v464_v41  ;;  %v472_v46 = vrot.slane %v471_v44, 1 }
 0x2f9   :  { %v473_v47 = vadd.f32 %v472_v46, %v471_v44  ;;  %v474_v48 = vmul.f32 0.125, %v466_v45 }
 0x2fb   :  { %v475_v49 = vmul.f32 0.125, %v473_v47  ;;  %v476_v50 = vmul.f32 %v474_v48, %v474_v48 }
 0x2fd   :  { %v477_v51 = vsub.f32 %v475_v49, %v476_v50 }
 0x2ff   :  { %v478_v52 = vmax.f32 %v477_v51, 0.0 }
 0x301   :  { %v479_v53 = vadd.f32 1e-05, %v478_v52 }
 0x303   :  { %1357 = vrsqrt.f32 %v479_v53 }
 0x310   :  { %v1358_v55 = vpop.eup %1357 }
 0x311   :  { %v481_v56 = vmul.f32 %v1358_v55, %v459_v54 }
 0x313   :  { %v482_v58 = vmul.f32 %v481_v56, %v474_v48  ;;  %v487_v59 = vrot.slane %v481_v56, %v1622_v27 }
 0x315   :  { %v483_v60 = vsub.f32 %v460_v57, %v482_v58  ;;  %v488_v61 = vmul.f32 %v487_v59, %v453_v31 }
 0x317   :  { %v492_v62 = vrot.slane %v483_v60, %v1622_v27 }
 0x319   :  { %v493_v63 = vadd.f32 %v492_v62, %v488_v61 }
 0x31b   :  { %vm494_vm4 = vcmp.ge.f32.partialorder %v493_v63, 0.0  ;;  %v495_v0 = vmul.f32 0.1, %v493_v63 }
 0x31d   :  { %v496_v1 = vsel %vm494_vm4, %v493_v63, %v495_v0 }
 0x31e   :  { %1525 = dma.done.wait [#allocation3 + $0x2], 1024 }
 0x31f   :  { %1526 = vsyncadd [#allocation3 + $0x2], 4294966272  ;;  %1234 = vmatprep.subr.bf16.mxu1 %v1533_v2  ;;  %1250 = vmatprep.mubr.msk.bf16.mxu1 %vm1534_vm1, %v1533_v2  ;;  %v1359_v3 = vld [vmem:[#allocation2 + $0xb8] sm:$0xff]   ;;  %v1360_v4 = vld [vmem:[#allocation2 + $0xb0] sm:$0xff]   ;;  %v499_v11 = vpack.c.bf16 %v496_v1, %v496_v1 }
 0x320   :  { %1235 = vmatpush3.bf16.msra.mxu1 %v1359_v3  ;;  %v1361_v5 = vld [vmem:[#allocation2 + $0xa8] sm:$0xff]   ;;  %v1362_v6 = vld [vmem:[#allocation2 + $0xa0] sm:$0xff]   ;;  %v1363_v7 = vld [vmem:[#allocation2 + $0x98] sm:$0xff]  }
 0x321   :  { %1236 = vmatprep.subr.bf16.mxu1 %v1533_v2  ;;  %v1364_v8 = vld [vmem:[#allocation2 + $0x90] sm:$0xff]   ;;  %v1365_v9 = vld [vmem:[#allocation2 + $0x88] sm:$0xff]   ;;  %v1366_v10 = vld [vmem:[#allocation2 + $0x80] sm:$0xff]  }
 0x322   :  { %v604_v37 = vld [vmem:[%s1815_s3 + $0x6] sm:$0x1]  ;;  %v605_v40 = vld [vmem:[%s1815_s3 + $0x7] sm:$0x1] }
 0x324   :  { %1237 = vmatpush3.bf16.msra.mxu1 %v1360_v4 }
 0x325   :  { %1238 = vmatprep.subr.bf16.mxu1 %v1533_v2 }
 0x328   :  { %1239 = vmatpush3.bf16.msra.mxu1 %v1361_v5 }
 0x329   :  { %1240 = vmatprep.subr.bf16.mxu1 %v1533_v2 }
 0x32c   :  { %1241 = vmatpush3.bf16.msra.mxu1 %v1362_v6 }
 0x32d   :  { %1242 = vmatprep.subr.bf16.mxu1 %v1533_v2 }
 0x330   :  { %1243 = vmatpush3.bf16.msra.mxu1 %v1363_v7 }
 0x331   :  { %1244 = vmatprep.subr.bf16.mxu1 %v1533_v2 }
 0x334   :  { %1245 = vmatpush3.bf16.msra.mxu1 %v1364_v8 }
 0x335   :  { %1246 = vmatprep.subr.bf16.mxu1 %v1533_v2 }
 0x338   :  { %1247 = vmatpush3.bf16.msra.mxu1 %v1365_v9 }
 0x339   :  { %1248 = vmatprep.subr.bf16.mxu1 %v1533_v2 }
 0x33c   :  { %1249 = vmatpush3.bf16.msra.mxu1 %v1366_v10 }
 0x33f   :  { %1251 = vmatmul.mubr.bf16.vlgmr.msra.gmra.mxu1 %v499_v11 }
 0x3ff   :  { %v598_v12 = vpop.f32.mrf.mxu1 }
 0x400   :  { %v606_v13 = vrot.slane %v598_v12, 4  ;;  %v612_v14 = vmul.f32 %v598_v12, %v598_v12 }
 0x401   :  { %v1252_v15 = vpop.f32.mrf.mxu1 }
 0x402   :  { %v607_v16 = vadd.f32 %v606_v13, %v598_v12  ;;  %v613_v17 = vrot.slane %v612_v14, 4 }
 0x403   :  { %v601_v18 = vpop.f32.mrf.mxu1 }
 0x404   :  { %v608_v19 = vrot.slane %v607_v16, 2  ;;  %v614_v21 = vadd.f32 %v613_v17, %v612_v14 }
 0x405   :  { %v1253_v22 = vpop.f32.mrf.mxu1 }
 0x406   :  { %v609_v23 = vadd.f32 %v608_v19, %v607_v16  ;;  %v615_v24 = vrot.slane %v614_v21, 2 }
 0x408   :  { %v610_v25 = vrot.slane %v609_v23, 1  ;;  %v616_v26 = vadd.f32 %v615_v24, %v614_v21 }
 0x40a   :  { %v611_v28 = vadd.f32 %v610_v25, %v609_v23  ;;  %v617_v29 = vrot.slane %v616_v26, 1 }
 0x40c   :  { %v618_v30 = vadd.f32 %v617_v29, %v616_v26  ;;  %v619_v31 = vmul.f32 0.125, %v611_v28 }
 0x40e   :  { %v620_v32 = vmul.f32 0.125, %v618_v30  ;;  %v621_v33 = vmul.f32 %v619_v31, %v619_v31 }
 0x410   :  { %v622_v34 = vsub.f32 %v620_v32, %v621_v33 }
 0x412   :  { %v623_v35 = vmax.f32 %v622_v34, 0.0 }
 0x414   :  { %v624_v36 = vadd.f32 1e-05, %v623_v35 }
 0x416   :  { %1367 = vrsqrt.f32 %v624_v36 }
 0x423   :  { %v1368_v38 = vpop.eup %1367 }
 0x424   :  { %v626_v39 = vmul.f32 %v1368_v38, %v604_v37 }
 0x426   :  { %v627_v41 = vmul.f32 %v626_v39, %v619_v31  ;;  %v632_v42 = vrot.slane %v626_v39, %v1622_v27 }
 0x428   :  { %v628_v43 = vsub.f32 %v605_v40, %v627_v41  ;;  %v633_v44 = vmul.f32 %v632_v42, %v598_v12 }
 0x42a   :  { %v637_v45 = vrot.slane %v628_v43, %v1622_v27 }
 0x42c   :  { %v638_v46 = vadd.f32 %v637_v45, %v633_v44 }
 0x42e   :  { %v639_v47 = vadd.f32 %v638_v46, %v1653_v20 }
 0x430   :  { %vm640_vm5 = vcmp.ge.f32.partialorder %v639_v47, 0.0  ;;  %v641_v48 = vmul.f32 0.1, %v639_v47 }
 0x432   :  { %v1694_v49 = vsel %vm640_vm5, %v639_v47, %v641_v48 }
 0x433   :  { %1527 = dma.done.wait [#allocation3 + $0x3], 1024 }
 0x434   :  { %1528 = vsyncadd [#allocation3 + $0x3], 4294966272  ;;  %1254 = vmatprep.subr.bf16.mxu0 %v1533_v2  ;;  %1270 = vmatprep.mubr.msk.bf16.mxu0 %vm1534_vm1, %v1533_v2  ;;  %v1369_v50 = vld [vmem:[#allocation2 + $0xf8] sm:$0xff]   ;;  %v1370_v51 = vld [vmem:[#allocation2 + $0xf0] sm:$0xff]   ;;  %v645_v57 = vpack.c.bf16 %v1694_v49, %v1694_v49 }
 0x435   :  { %1255 = vmatpush3.bf16.msra.mxu0 %v1369_v50  ;;  %v1371_v52 = vld [vmem:[#allocation2 + $0xe8] sm:$0xff]   ;;  %v1372_v20 = vld [vmem:[#allocation2 + $0xe0] sm:$0xff]   ;;  %v1373_v53 = vld [vmem:[#allocation2 + $0xd8] sm:$0xff]  }
 0x436   :  { %1256 = vmatprep.subr.bf16.mxu0 %v1533_v2  ;;  %v1374_v54 = vld [vmem:[#allocation2 + $0xd0] sm:$0xff]   ;;  %v1375_v55 = vld [vmem:[#allocation2 + $0xc8] sm:$0xff]   ;;  %v1376_v56 = vld [vmem:[#allocation2 + $0xc0] sm:$0xff]  }
 0x437   :  { %v750_v18 = vld [vmem:[%s1815_s3 + $0x8] sm:$0x1]  ;;  %v751_v22 = vld [vmem:[%s1815_s3 + $0x9] sm:$0x1] }
 0x439   :  { %1257 = vmatpush3.bf16.msra.mxu0 %v1370_v51 }
 0x43a   :  { %1258 = vmatprep.subr.bf16.mxu0 %v1533_v2 }
 0x43d   :  { %1259 = vmatpush3.bf16.msra.mxu0 %v1371_v52 }
 0x43e   :  { %1260 = vmatprep.subr.bf16.mxu0 %v1533_v2 }
 0x441   :  { %1261 = vmatpush3.bf16.msra.mxu0 %v1372_v20 }
 0x442   :  { %1262 = vmatprep.subr.bf16.mxu0 %v1533_v2 }
 0x445   :  { %1263 = vmatpush3.bf16.msra.mxu0 %v1373_v53 }
 0x446   :  { %1264 = vmatprep.subr.bf16.mxu0 %v1533_v2 }
 0x449   :  { %1265 = vmatpush3.bf16.msra.mxu0 %v1374_v54 }
 0x44a   :  { %1266 = vmatprep.subr.bf16.mxu0 %v1533_v2 }
 0x44d   :  { %1267 = vmatpush3.bf16.msra.mxu0 %v1375_v55 }
 0x44e   :  { %1268 = vmatprep.subr.bf16.mxu0 %v1533_v2 }
 0x451   :  { %1269 = vmatpush3.bf16.msra.mxu0 %v1376_v56 }
 0x454   :  { %1271 = vmatmul.mubr.bf16.vlgmr.msra.gmra.mxu0 %v645_v57 }
 0x514   :  { %v744_v58 = vpop.f32.mrf.mxu0 }
 0x515   :  { %v752_v59 = vrot.slane %v744_v58, 4  ;;  %v758_v60 = vmul.f32 %v744_v58, %v744_v58 }
 0x516   :  { %v1272_v61 = vpop.f32.mrf.mxu0 }
 0x517   :  { %v753_v62 = vadd.f32 %v752_v59, %v744_v58  ;;  %v759_v63 = vrot.slane %v758_v60, 4 }
 0x518   :  { %v747_v0 = vpop.f32.mrf.mxu0 }
 0x519   :  { %v754_v1 = vrot.slane %v753_v62, 2  ;;  %v760_v3 = vadd.f32 %v759_v63, %v758_v60 }
 0x51a   :  { %v1273_v4 = vpop.f32.mrf.mxu0 }
 0x51b   :  { %v755_v5 = vadd.f32 %v754_v1, %v753_v62  ;;  %v761_v6 = vrot.slane %v760_v3, 2 }
 0x51d   :  { %v756_v7 = vrot.slane %v755_v5, 1  ;;  %v762_v8 = vadd.f32 %v761_v6, %v760_v3 }
 0x51f   :  { %v757_v9 = vadd.f32 %v756_v7, %v755_v5  ;;  %v763_v10 = vrot.slane %v762_v8, 1 }
 0x521   :  { %v764_v11 = vadd.f32 %v763_v10, %v762_v8  ;;  %v765_v12 = vmul.f32 0.125, %v757_v9 }
 0x523   :  { %v766_v13 = vmul.f32 0.125, %v764_v11  ;;  %v767_v14 = vmul.f32 %v765_v12, %v765_v12 }
 0x525   :  { %v768_v15 = vsub.f32 %v766_v13, %v767_v14 }
 0x527   :  { %v769_v16 = vmax.f32 %v768_v15, 0.0 }
 0x529   :  { %v770_v17 = vadd.f32 1e-05, %v769_v16 }
 0x52b   :  { %1377 = vrsqrt.f32 %v770_v17 }
 0x538   :  { %v1378_v19 = vpop.eup %1377 }
 0x539   :  { %v772_v21 = vmul.f32 %v1378_v19, %v750_v18 }
 0x53b   :  { %v773_v23 = vmul.f32 %v772_v21, %v765_v12  ;;  %v778_v24 = vrot.slane %v772_v21, %v1622_v27 }
 0x53d   :  { %v774_v25 = vsub.f32 %v751_v22, %v773_v23  ;;  %v779_v26 = vmul.f32 %v778_v24, %v744_v58 }
 0x53f   :  { %v783_v28 = vrot.slane %v774_v25, %v1622_v27 }
 0x541   :  { %v784_v29 = vadd.f32 %v783_v28, %v779_v26 }
 0x543   :  { %v785_v30 = vadd.f32 %v784_v29, %v1694_v49 }
 0x545   :  { %vm786_vm6 = vcmp.ge.f32.partialorder %v785_v30, 0.0  ;;  %v787_v31 = vmul.f32 0.1, %v785_v30 }
 0x547   :  { %v1717_v32 = vsel %vm786_vm6, %v785_v30, %v787_v31 }
 0x548   :  { %1529 = dma.done.wait [#allocation3 + $0x4], 1024 }
 0x549   :  { %1530 = vsyncadd [#allocation3 + $0x4], 4294966272  ;;  %1274 = vmatprep.subr.bf16.mxu1 %v1533_v2  ;;  %1290 = vmatprep.mubr.msk.bf16.mxu1 %vm1534_vm1, %v1533_v2  ;;  %v1379_v33 = vld [vmem:[#allocation2 + $0x138] sm:$0xff]   ;;  %v1380_v34 = vld [vmem:[#allocation2 + $0x130] sm:$0xff]   ;;  %v791_v41 = vpack.c.bf16 %v1717_v32, %v1717_v32  ;;  %s1540_s29 = smov [#allocation4]   ;;  %vm1028_vm8 = vcmask 39936  }
 0x54a   :  { %1294 = vmatprep.subr.mxu0 %v1533_v2  ;;  %1326 = vmatprep.mubr.msk.f32.mxu0 %vm1534_vm1, %v1533_v2  ;;  %v1381_v35 = vld [vmem:[#allocation2 + $0x128] sm:$0xff]   ;;  %v1382_v36 = vld [vmem:[#allocation2 + $0x120] sm:$0xff]   ;;  %v1383_v37 = vld [vmem:[#allocation2 + $0x118] sm:$0xff]  }
 0x54b   :  { %1275 = vmatpush3.bf16.msra.mxu1 %v1379_v33  ;;  %v1384_v38 = vld [vmem:[#allocation2 + $0x110] sm:$0xff]   ;;  %v1385_v39 = vld [vmem:[#allocation2 + $0x108] sm:$0xff]   ;;  %v1386_v40 = vld [vmem:[#allocation2 + $0x100] sm:$0xff]  }
 0x54c   :  { %1276 = vmatprep.subr.bf16.mxu1 %v1533_v2  ;;  %v950_v42 = vld [vmem:[%s1816_s4 + $0x78] sm:$0xff]  ;;  %v949_v43 = vld [vmem:[%s1816_s4 + $0x70] sm:$0xff]  ;;  %v948_v44 = vld [vmem:[%s1816_s4 + $0x68] sm:$0xff] }
 0x54d   :  { %1295 = vmatpush3.msra.mxu0 %v950_v42  ;;  %v947_v45 = vld [vmem:[%s1816_s4 + $0x60] sm:$0xff]  ;;  %v946_v46 = vld [vmem:[%s1816_s4 + $0x58] sm:$0xff]  ;;  %v945_v47 = vld [vmem:[%s1816_s4 + $0x50] sm:$0xff] }
 0x54e   :  { %1296 = vmatprep.subr.mxu0 %v1533_v2  ;;  %v944_v48 = vld [vmem:[%s1816_s4 + $0x48] sm:$0xff]  ;;  %v943_v49 = vld [vmem:[%s1816_s4 + $0x40] sm:$0xff]  ;;  %v942_v50 = vld [vmem:[%s1816_s4 + $0x38] sm:$0xff] }
 0x54f   :  { %1277 = vmatpush3.bf16.msra.mxu1 %v1380_v34  ;;  %1297 = vmatpush3.msra.mxu0 %v949_v43  ;;  %v941_v51 = vld [vmem:[%s1816_s4 + $0x30] sm:$0xff]  ;;  %v940_v52 = vld [vmem:[%s1816_s4 + $0x28] sm:$0xff]  ;;  %v939_v20 = vld [vmem:[%s1816_s4 + $0x20] sm:$0xff] }
 0x550   :  { %1278 = vmatprep.subr.bf16.mxu1 %v1533_v2  ;;  %1298 = vmatprep.subr.mxu0 %v1533_v2  ;;  %v938_v53 = vld [vmem:[%s1816_s4 + $0x18] sm:$0xff]  ;;  %v937_v54 = vld [vmem:[%s1816_s4 + $0x10] sm:$0xff]  ;;  %v936_v55 = vld [vmem:[%s1816_s4 + $0x8] sm:$0xff] }
 0x551   :  { %1299 = vmatpush3.msra.mxu0 %v948_v44  ;;  %v935_v56 = vld [vmem:[%s1816_s4] sm:$0xff]  ;;  %v896_v16 = vld [vmem:[%s1815_s3 + $0xa] sm:$0x1]  ;;  %v897_v19 = vld [vmem:[%s1815_s3 + $0xb] sm:$0x1]  ;;  %s1036_s3 = sshll.u32 %s1540_s29, 4  ;;  %s1037_s3 = int_to_ptr.vmem [resolvable:$true] %s1036_s3 }
 0x552   :  { %1300 = vmatprep.subr.mxu0 %v1533_v2  ;;  %v1119_v31 = vld [vmem:[%s1817_s5] ss:$0 sm:$0xff]  ;;  %s1501_s30 = scalar_lea.vmem %s1037_s3, 128  ;;  %p1506_p12 = scmp.lt.s32.totalorder %s1037_s3, %s1037_s3 }
 0x553   :  { %1279 = vmatpush3.bf16.msra.mxu1 %v1381_v35  ;;  %1301 = vmatpush3.msra.mxu0 %v947_v45  ;;  %p1502_p11 = scmp.ne.s32.totalorder %s1037_s3, %s1501_s30  ;;  %p1507_p13 = scmp.lt.s32.totalorder %s1501_s30, %s1501_s30 }
 0x554   :  { %1280 = vmatprep.subr.bf16.mxu1 %v1533_v2  ;;  %1302 = vmatprep.subr.mxu0 %v1533_v2 }
 0x555   :  { %1303 = vmatpush3.msra.mxu0 %v946_v46  ;;  %p1508_p0 = por %p1507_p13, %p1506_p12 }
 0x556   :  { %1304 = vmatprep.subr.mxu0 %v1533_v2 }
 0x557   :  { %1281 = vmatpush3.bf16.msra.mxu1 %v1382_v36  ;;  %1305 = vmatpush3.msra.mxu0 %v945_v47  ;;  %p1509_p1 = pnand %p1508_p0, %p1502_p11 }
 0x558   :  { %1282 = vmatprep.subr.bf16.mxu1 %v1533_v2  ;;  %1306 = vmatprep.subr.mxu0 %v1533_v2 }
 0x559   :  { %1307 = vmatpush3.msra.mxu0 %v944_v48 }
 0x55a   :  { %1308 = vmatprep.subr.mxu0 %v1533_v2 }
 0x55b   :  { %1283 = vmatpush3.bf16.msra.mxu1 %v1383_v37  ;;  %1309 = vmatpush3.msra.mxu0 %v943_v49 }
 0x55c   :  { %1284 = vmatprep.subr.bf16.mxu1 %v1533_v2  ;;  %1310 = vmatprep.subr.mxu0 %v1533_v2 }
 0x55d   :  { %1311 = vmatpush3.msra.mxu0 %v942_v50 }
 0x55e   :  { %1312 = vmatprep.subr.mxu0 %v1533_v2 }
 0x55f   :  { %1285 = vmatpush3.bf16.msra.mxu1 %v1384_v38  ;;  %1313 = vmatpush3.msra.mxu0 %v941_v51 }
 0x560   :  { %1286 = vmatprep.subr.bf16.mxu1 %v1533_v2  ;;  %1314 = vmatprep.subr.mxu0 %v1533_v2 }
 0x561   :  { %1315 = vmatpush3.msra.mxu0 %v940_v52 }
 0x562   :  { %1316 = vmatprep.subr.mxu0 %v1533_v2 }
 0x563   :  { %1287 = vmatpush3.bf16.msra.mxu1 %v1385_v39  ;;  %1317 = vmatpush3.msra.mxu0 %v939_v20 }
 0x564   :  { %1288 = vmatprep.subr.bf16.mxu1 %v1533_v2  ;;  %1318 = vmatprep.subr.mxu0 %v1533_v2 }
 0x565   :  { %1319 = vmatpush3.msra.mxu0 %v938_v53 }
 0x566   :  { %1320 = vmatprep.subr.mxu0 %v1533_v2 }
 0x567   :  { %1289 = vmatpush3.bf16.msra.mxu1 %v1386_v40  ;;  %1321 = vmatpush3.msra.mxu0 %v937_v54 }
 0x568   :  { %1322 = vmatprep.subr.mxu0 %v1533_v2 }
 0x569   :  { %1323 = vmatpush3.msra.mxu0 %v936_v55 }
 0x56a   :  { %1291 = vmatmul.mubr.bf16.vlgmr.msra.gmra.mxu1 %v791_v41  ;;  %1324 = vmatprep.subr.mxu0 %v1533_v2 }
 0x56b   :  { %1325 = vmatpush3.msra.mxu0 %v935_v56 }
 0x62a   :  { %v890_v57 = vpop.f32.mrf.mxu1 }
 0x62b   :  { %v898_v58 = vrot.slane %v890_v57, 4  ;;  %v904_v59 = vmul.f32 %v890_v57, %v890_v57 }
 0x62c   :  { %v1292_v60 = vpop.f32.mrf.mxu1 }
 0x62d   :  { %v899_v61 = vadd.f32 %v898_v58, %v890_v57  ;;  %v905_v62 = vrot.slane %v904_v59, 4 }
 0x62e   :  { %v893_v63 = vpop.f32.mrf.mxu1 }
 0x62f   :  { %v900_v0 = vrot.slane %v899_v61, 2  ;;  %v906_v1 = vadd.f32 %v905_v62, %v904_v59 }
 0x630   :  { %v1293_v3 = vpop.f32.mrf.mxu1 }
 0x631   :  { %v901_v4 = vadd.f32 %v900_v0, %v899_v61  ;;  %v907_v5 = vrot.slane %v906_v1, 2 }
 0x633   :  { %v902_v6 = vrot.slane %v901_v4, 1  ;;  %v908_v7 = vadd.f32 %v907_v5, %v906_v1 }
 0x635   :  { %v903_v8 = vadd.f32 %v902_v6, %v901_v4  ;;  %v909_v9 = vrot.slane %v908_v7, 1 }
 0x637   :  { %v910_v10 = vadd.f32 %v909_v9, %v908_v7  ;;  %v911_v11 = vmul.f32 0.125, %v903_v8 }
 0x639   :  { %v912_v2 = vmul.f32 0.125, %v910_v10  ;;  %v913_v12 = vmul.f32 %v911_v11, %v911_v11 }
 0x63b   :  { %v914_v13 = vsub.f32 %v912_v2, %v913_v12 }
 0x63d   :  { %v915_v14 = vmax.f32 %v914_v13, 0.0 }
 0x63f   :  { %v916_v15 = vadd.f32 1e-05, %v915_v14 }
 0x641   :  { %1387 = vrsqrt.f32 %v916_v15 }
 0x64e   :  { %v1388_v17 = vpop.eup %1387 }
 0x64f   :  { %v918_v18 = vmul.f32 %v1388_v17, %v896_v16 }
 0x651   :  { %v919_v21 = vmul.f32 %v918_v18, %v911_v11  ;;  %v924_v22 = vrot.slane %v918_v18, %v1622_v27 }
 0x653   :  { %v920_v23 = vsub.f32 %v897_v19, %v919_v21  ;;  %v925_v24 = vmul.f32 %v924_v22, %v890_v57 }
 0x655   :  { %v929_v25 = vrot.slane %v920_v23, %v1622_v27 }
 0x657   :  { %v930_v26 = vadd.f32 %v929_v25, %v925_v24 }
 0x659   :  { %vm931_vm7 = vcmp.ge.f32.partialorder %v930_v26, 0.0  ;;  %v932_v28 = vmul.f32 0.1, %v930_v26 }
 0x65b   :  { %v933_v29 = vsel %vm931_vm7, %v930_v26, %v932_v28 }
 0x65c   :  { %v934_v30 = vadd.f32 %v933_v29, %v1717_v32 }
 0x65e   :  { %1327 = vmatmul.mubr.f32.vlgmr.msra.gmra.mxu0 %v934_v30 }
 0x71e   :  { %v1024_v33 = vpop.f32.mrf.mxu0 }
 0x71f   :  { %v1025_v34 = vadd.f32 %v1119_v31, %v1024_v33 }
 0x720   :  { %v1328_v35 = vpop.f32.mrf.mxu0 }
 0x721   :  { %1029 = vst.msk [vmem:[#allocation4] sm:$0xff] %vm1028_vm8, %v1025_v34 }
 0x722   :  { %1512 = shalt.err (!%p1509_p1)
}
 0x723   :  { %1039 = dma.vmem_to_hbm [thread:$0]  %s1037_s3, 128, %s1818_s6, [#allocation5]  }
 0x724   :  { %1531 = dma.done.wait [#allocation5], 128  }
 0x725   :  { %1532 = vsyncadd [#allocation5], 4294967168 }
 0x726   :  { %1043 = vsyncpa [#allocation5], 1 }
 0x727   :  { %1044 = vsyncmov [#allocation3] }
 0x72a   :  { %s1045_s5 = vpop.sfrf %1044 }
 0x72b   :  { %p1120_p2 = scmp.ne.s32.totalorder %s1045_s5, 0 }
 0x72d   :  { %1049 = shalt.err (%p1120_p2)  }
 0x72e   :  { %1051 = vsyncmov [#allocation3 + $0x1] }
 0x731   :  { %s1052_s9 = vpop.sfrf %1051 }
 0x732   :  { %p1121_p3 = scmp.ne.s32.totalorder %s1052_s9, 0 }
 0x734   :  { %1056 = shalt.err (%p1121_p3)  }
 0x735   :  { %1058 = vsyncmov [#allocation3 + $0x2] }
 0x738   :  { %s1059_s10 = vpop.sfrf %1058 }
 0x739   :  { %p1122_p4 = scmp.ne.s32.totalorder %s1059_s10, 0 }
 0x73b   :  { %1063 = shalt.err (%p1122_p4)  }
 0x73c   :  { %1065 = vsyncmov [#allocation3 + $0x3] }
 0x73f   :  { %s1066_s11 = vpop.sfrf %1065 }
 0x740   :  { %p1123_p5 = scmp.ne.s32.totalorder %s1066_s11, 0 }
 0x742   :  { %1070 = shalt.err (%p1123_p5)  }
 0x743   :  { %1072 = vsyncmov [#allocation3 + $0x4] }
 0x746   :  { %s1073_s6 = vpop.sfrf %1072 }
 0x747   :  { %p1124_p6 = scmp.ne.s32.totalorder %s1073_s6, 0 }
 0x749   :  { %1077 = shalt.err (%p1124_p6)  }

</bundles_post_ra>
